<compile_context>
chip_gen: v7x
topology: tpu7x:2x2x1
jax: 0.10.0
libtpu: 0.0.40
codegen_flags: <defaults>
</compile_context>

<pallas_src>
import functools

import jax
import jax.numpy as jnp
from jax import lax
from jax.experimental import pallas as pl
from jax.experimental.pallas import tpu as pltpu


def _round_up(x, m):
    return ((x + m - 1) // m) * m


# ----------------------------- Pallas kernel ------------------------------- #
def _conv_tap_kernel(x_ref, w_ref, b_ref, o_ref, *, ksize, oh, ow, stride):
    """Conv + bias + ReLU for one padded sample, as a KH*KW-tap reduction.

    x_ref: (HP, WP, Cp)        padded NHWC input slab (bf16)
    w_ref: (KH*KW, Cp, O_pad)  per-tap flattened weights (bf16)
    b_ref: (1, O_pad)          bias (f32)
    o_ref: (OH*OW, O_pad)      output (f32), lane-dense (O_pad % 128 == 0)
    """
    c = x_ref.shape[-1]
    o_pad = o_ref.shape[-1]

    acc = jnp.zeros((oh * ow, o_pad), jnp.float32)
    for kh in range(ksize):
        for kw in range(ksize):
            if stride == 1:
                win = x_ref[kh:kh + oh, kw:kw + ow, :]            # (OH, OW, Cp)
            else:
                win = x_ref[pl.ds(kh, oh, stride),
                            pl.ds(kw, ow, stride), :]             # (OH, OW, Cp)
            # (OH, OW, Cp) -> (OH*OW, Cp): minor (lane) dim unchanged, so this
            # collapse is a cheap layout-preserving reshape.
            lhs = win.reshape(oh * ow, c)
            tap = kh * ksize + kw
            acc = acc + jnp.dot(lhs, w_ref[tap],
                                preferred_element_type=jnp.float32)
    acc = acc + b_ref[...]
    o_ref[...] = jnp.maximum(acc, 0.0).astype(o_ref.dtype)


# ------------------------------ wrapper (JAX) ------------------------------ #
def _conv2d_relu_pallas(x_nchw, weight, bias, *, stride, pad):
    """x: (N,C,H,W) f32; weight: (O,C,K,K) f32; bias: (O,) f32 -> (N,O,OH,OW) f32."""
    n, c, h, w = x_nchw.shape
    o, _, k, _ = weight.shape
    oh = (h + 2 * pad - k) // stride + 1
    ow = (w + 2 * pad - k) // stride + 1

    c_pad = _round_up(c, 8)        # sublane-friendly contraction dim (zeros)
    o_pad = _round_up(o, 128)      # lane-dense output columns (zeros)

    # Padded NHWC input slab in bf16 (accumulation stays f32 in-kernel).
    xp = jnp.pad(x_nchw, ((0, 0), (0, 0), (pad, pad), (pad, pad)))
    xp = jnp.transpose(xp, (0, 2, 3, 1))                       # (N, HP, WP, C)
    xp = jnp.pad(xp, ((0, 0), (0, 0), (0, 0), (0, c_pad - c)))
    xp = xp.astype(jnp.bfloat16)
    hp, wp = xp.shape[1], xp.shape[2]

    # Per-tap weights: (KH*KW, Cp, O_pad), padded with zeros (numerically free).
    w_taps = jnp.transpose(weight, (2, 3, 1, 0)).reshape(k * k, c, o)
    w_taps = jnp.pad(w_taps, ((0, 0), (0, c_pad - c), (0, o_pad - o)))
    w_taps = w_taps.astype(jnp.bfloat16)
    b2d = jnp.pad(bias, (0, o_pad - o)).reshape(1, o_pad).astype(jnp.float32)

    kernel = functools.partial(_conv_tap_kernel,
                               ksize=k, oh=oh, ow=ow, stride=stride)

    out = pl.pallas_call(
        kernel,
        out_shape=jax.ShapeDtypeStruct((n, oh * ow, o_pad), jnp.float32),
        grid_spec=pltpu.PrefetchScalarGridSpec(
            num_scalar_prefetch=0,
            grid=(n,),
            in_specs=[
                # One full padded sample per grid step (last two dims = full
                # array dims, so the (8,128) divisibility rule is satisfied).
                pl.BlockSpec((None, hp, wp, c_pad), lambda i: (i, 0, 0, 0)),
                # Weights / bias resident across the whole grid.
                pl.BlockSpec((k * k, c_pad, o_pad), lambda i: (0, 0, 0)),
                pl.BlockSpec((1, o_pad), lambda i: (0, 0)),
            ],
            out_specs=pl.BlockSpec((None, oh * ow, o_pad), lambda i: (i, 0, 0)),
        ),
        compiler_params=pltpu.CompilerParams(
            dimension_semantics=("parallel",),      # shards batch across TCs (v7x)
            vmem_limit_bytes=32 * 1024 * 1024),     # v5e default is only 16 MiB
    )(xp, w_taps, b2d)

    out = out[:, :, :o].reshape(n, oh, ow, o)
    return jnp.transpose(out, (0, 3, 1, 2))         # NCHW


class BasicConv2dPallas:
    """Pallas equivalent of Basic_Conv2d: Conv2d(k, stride, pad) + ReLU."""

    def __init__(self, nb_in_channels, nb_out_channels, conv_k, conv_stride,
                 conv_pad, key):
        self.c_in = nb_in_channels
        self.c_out = nb_out_channels
        self.k = conv_k
        self.stride = conv_stride
        self.pad = conv_pad

        kw_key, kb_key = jax.random.split(key)
        fan_in = nb_in_channels * conv_k * conv_k
        bound = 1.0 / float(fan_in) ** 0.5
        # PyTorch-shaped weight: (O, C, KH, KW), bias: (O,)
        self.weight = jax.random.uniform(
            kw_key, (nb_out_channels, nb_in_channels, conv_k, conv_k),
            dtype=jnp.float32, minval=-bound, maxval=bound)
        self.bias = jax.random.uniform(
            kb_key, (nb_out_channels,), dtype=jnp.float32,
            minval=-bound, maxval=bound)

    @functools.partial(jax.jit, static_argnums=0)
    def __call__(self, x_nchw):
        return _conv2d_relu_pallas(x_nchw, self.weight, self.bias,
                                   stride=self.stride, pad=self.pad)


# --------------------------------- main ------------------------------------ #
if __name__ == "__main__":
    key = jax.random.PRNGKey(0)
    k_x, k_p = jax.random.split(key)

    # batch=2, C_in=4, 16x16 spatial, C_out=8, kernel=3, stride=1, pad=1.
    x = jax.random.normal(k_x, (2, 4, 16, 16), dtype=jnp.float32)
    module = BasicConv2dPallas(nb_in_channels=4, nb_out_channels=8,
                               conv_k=3, conv_stride=1, conv_pad=1, key=k_p)

    y = jax.block_until_ready(module(x))

    # Reference 1: same bf16 operand rounding as the kernel, f32 accumulation.
    xb = x.astype(jnp.bfloat16).astype(jnp.float32)
    wb = module.weight.astype(jnp.bfloat16).astype(jnp.float32)
    ref = lax.conv_general_dilated(
        xb, wb, window_strides=(1, 1), padding=[(1, 1), (1, 1)],
        dimension_numbers=("NCHW", "OIHW", "NCHW"),
        precision=lax.Precision.HIGHEST)
    ref = jnp.maximum(ref + module.bias.reshape(1, -1, 1, 1), 0.0)
    assert y.shape == ref.shape == (2, 8, 16, 16)
    assert jnp.allclose(y, ref, atol=1e-2, rtol=1e-2)

    # Reference 2: original f32 module semantics (looser tol for bf16 operands).
    ref32 = lax.conv_general_dilated(
        x, module.weight, window_strides=(1, 1), padding=[(1, 1), (1, 1)],
        dimension_numbers=("NCHW", "OIHW", "NCHW"),
        precision=lax.Precision.HIGHEST)
    ref32 = jnp.maximum(ref32 + module.bias.reshape(1, -1, 1, 1), 0.0)
    assert jnp.allclose(y, ref32, atol=1e-1, rtol=1e-1)

    print("KERNEL_OK")
</pallas_src>

<mosaic_0001>
module attributes {stable_mosaic.version = 11 : i64} {
  func.func @_conv_tap_kernel(%arg0: i32, %arg1: memref<1x18x18x8xbf16, #tpu.memory_space<vmem>>, %arg2: memref<9x8x128xbf16, #tpu.memory_space<vmem>>, %arg3: memref<1x128xf32, #tpu.memory_space<vmem>>, %arg4: memref<1x256x128xf32, #tpu.memory_space<vmem>>) attributes {dimension_semantics = [#tpu.dimension_semantics<parallel>], iteration_bounds = array<i64: 2>, scalar_prefetch = 0 : i64, scratch_operands = 0 : i64, tpu.core_type = #tpu.core_type<tc>, window_params = [{transform_indices = @transform_0, window_bounds = array<i64: 1, 18, 18, 8>}, {pipeline_mode = #tpu.pipeline_mode<synchronous>, transform_indices = @transform_1, window_bounds = array<i64: 9, 8, 128>}, {pipeline_mode = #tpu.pipeline_mode<synchronous>, transform_indices = @transform_2, window_bounds = array<i64: 1, 128>}, {transform_indices = @transform_3, window_bounds = array<i64: 1, 256, 128>}]} {
    %cst = arith.constant 0.000000e+00 : f32
    %0 = vector.broadcast %cst : f32 to vector<256x128xf32>
    %c0 = arith.constant 0 : index
    %c0_0 = arith.constant 0 : index
    %c0_1 = arith.constant 0 : index
    %c0_2 = arith.constant 0 : index
    %1 = vector.load %arg1[%c0, %c0_0, %c0_1, %c0_2] : memref<1x18x18x8xbf16, #tpu.memory_space<vmem>>, vector<1x16x16x8xbf16>
    %2 = vector.shape_cast %1 : vector<1x16x16x8xbf16> to vector<16x16x8xbf16>
    %3 = vector.shape_cast %2 : vector<16x16x8xbf16> to vector<256x8xbf16>
    %c0_3 = arith.constant 0 : index
    %c0_4 = arith.constant 0 : index
    %c0_5 = arith.constant 0 : index
    %4 = vector.load %arg2[%c0_3, %c0_4, %c0_5] : memref<9x8x128xbf16, #tpu.memory_space<vmem>>, vector<1x8x128xbf16>
    %5 = vector.shape_cast %4 : vector<1x8x128xbf16> to vector<8x128xbf16>
    %cst_6 = arith.constant dense<0.000000e+00> : vector<256x128xf32>
    %6 = tpu.matmul %3, %5, %cst_6 {dimension_numbers = #tpu.dot_dimension_numbers<[1], [0], [0], [1], [0, 0, 1, 1], [], []>} : vector<256x8xbf16>, vector<8x128xbf16>, vector<256x128xf32> -> vector<256x128xf32>
    %7 = arith.addf %0, %6 : vector<256x128xf32>
    %c0_7 = arith.constant 0 : index
    %c0_8 = arith.constant 0 : index
    %c1 = arith.constant 1 : index
    %c0_9 = arith.constant 0 : index
    %8 = vector.load %arg1[%c0_7, %c0_8, %c1, %c0_9] : memref<1x18x18x8xbf16, #tpu.memory_space<vmem>>, vector<1x16x16x8xbf16>
    %9 = vector.shape_cast %8 : vector<1x16x16x8xbf16> to vector<16x16x8xbf16>
    %10 = vector.shape_cast %9 : vector<16x16x8xbf16> to vector<256x8xbf16>
    %c1_10 = arith.constant 1 : index
    %c0_11 = arith.constant 0 : index
    %c0_12 = arith.constant 0 : index
    %11 = vector.load %arg2[%c1_10, %c0_11, %c0_12] : memref<9x8x128xbf16, #tpu.memory_space<vmem>>, vector<1x8x128xbf16>
    %12 = vector.shape_cast %11 : vector<1x8x128xbf16> to vector<8x128xbf16>
    %cst_13 = arith.constant dense<0.000000e+00> : vector<256x128xf32>
    %13 = tpu.matmul %10, %12, %cst_13 {dimension_numbers = #tpu.dot_dimension_numbers<[1], [0], [0], [1], [0, 0, 1, 1], [], []>} : vector<256x8xbf16>, vector<8x128xbf16>, vector<256x128xf32> -> vector<256x128xf32>
    %14 = arith.addf %7, %13 : vector<256x128xf32>
    %c0_14 = arith.constant 0 : index
    %c0_15 = arith.constant 0 : index
    %c2 = arith.constant 2 : index
    %c0_16 = arith.constant 0 : index
    %15 = vector.load %arg1[%c0_14, %c0_15, %c2, %c0_16] : memref<1x18x18x8xbf16, #tpu.memory_space<vmem>>, vector<1x16x16x8xbf16>
    %16 = vector.shape_cast %15 : vector<1x16x16x8xbf16> to vector<16x16x8xbf16>
    %17 = vector.shape_cast %16 : vector<16x16x8xbf16> to vector<256x8xbf16>
    %c2_17 = arith.constant 2 : index
    %c0_18 = arith.constant 0 : index
    %c0_19 = arith.constant 0 : index
    %18 = vector.load %arg2[%c2_17, %c0_18, %c0_19] : memref<9x8x128xbf16, #tpu.memory_space<vmem>>, vector<1x8x128xbf16>
    %19 = vector.shape_cast %18 : vector<1x8x128xbf16> to vector<8x128xbf16>
    %cst_20 = arith.constant dense<0.000000e+00> : vector<256x128xf32>
    %20 = tpu.matmul %17, %19, %cst_20 {dimension_numbers = #tpu.dot_dimension_numbers<[1], [0], [0], [1], [0, 0, 1, 1], [], []>} : vector<256x8xbf16>, vector<8x128xbf16>, vector<256x128xf32> -> vector<256x128xf32>
    %21 = arith.addf %14, %20 : vector<256x128xf32>
    %c0_21 = arith.constant 0 : index
    %c1_22 = arith.constant 1 : index
    %c0_23 = arith.constant 0 : index
    %c0_24 = arith.constant 0 : index
    %22 = vector.load %arg1[%c0_21, %c1_22, %c0_23, %c0_24] : memref<1x18x18x8xbf16, #tpu.memory_space<vmem>>, vector<1x16x16x8xbf16>
    %23 = vector.shape_cast %22 : vector<1x16x16x8xbf16> to vector<16x16x8xbf16>
    %24 = vector.shape_cast %23 : vector<16x16x8xbf16> to vector<256x8xbf16>
    %c3 = arith.constant 3 : index
    %c0_25 = arith.constant 0 : index
    %c0_26 = arith.constant 0 : index
    %25 = vector.load %arg2[%c3, %c0_25, %c0_26] : memref<9x8x128xbf16, #tpu.memory_space<vmem>>, vector<1x8x128xbf16>
    %26 = vector.shape_cast %25 : vector<1x8x128xbf16> to vector<8x128xbf16>
    %cst_27 = arith.constant dense<0.000000e+00> : vector<256x128xf32>
    %27 = tpu.matmul %24, %26, %cst_27 {dimension_numbers = #tpu.dot_dimension_numbers<[1], [0], [0], [1], [0, 0, 1, 1], [], []>} : vector<256x8xbf16>, vector<8x128xbf16>, vector<256x128xf32> -> vector<256x128xf32>
    %28 = arith.addf %21, %27 : vector<256x128xf32>
    %c0_28 = arith.constant 0 : index
    %c1_29 = arith.constant 1 : index
    %c1_30 = arith.constant 1 : index
    %c0_31 = arith.constant 0 : index
    %29 = vector.load %arg1[%c0_28, %c1_29, %c1_30, %c0_31] : memref<1x18x18x8xbf16, #tpu.memory_space<vmem>>, vector<1x16x16x8xbf16>
    %30 = vector.shape_cast %29 : vector<1x16x16x8xbf16> to vector<16x16x8xbf16>
    %31 = vector.shape_cast %30 : vector<16x16x8xbf16> to vector<256x8xbf16>
    %c4 = arith.constant 4 : index
    %c0_32 = arith.constant 0 : index
    %c0_33 = arith.constant 0 : index
    %32 = vector.load %arg2[%c4, %c0_32, %c0_33] : memref<9x8x128xbf16, #tpu.memory_space<vmem>>, vector<1x8x128xbf16>
    %33 = vector.shape_cast %32 : vector<1x8x128xbf16> to vector<8x128xbf16>
    %cst_34 = arith.constant dense<0.000000e+00> : vector<256x128xf32>
    %34 = tpu.matmul %31, %33, %cst_34 {dimension_numbers = #tpu.dot_dimension_numbers<[1], [0], [0], [1], [0, 0, 1, 1], [], []>} : vector<256x8xbf16>, vector<8x128xbf16>, vector<256x128xf32> -> vector<256x128xf32>
    %35 = arith.addf %28, %34 : vector<256x128xf32>
    %c0_35 = arith.constant 0 : index
    %c1_36 = arith.constant 1 : index
    %c2_37 = arith.constant 2 : index
    %c0_38 = arith.constant 0 : index
    %36 = vector.load %arg1[%c0_35, %c1_36, %c2_37, %c0_38] : memref<1x18x18x8xbf16, #tpu.memory_space<vmem>>, vector<1x16x16x8xbf16>
    %37 = vector.shape_cast %36 : vector<1x16x16x8xbf16> to vector<16x16x8xbf16>
    %38 = vector.shape_cast %37 : vector<16x16x8xbf16> to vector<256x8xbf16>
    %c5 = arith.constant 5 : index
    %c0_39 = arith.constant 0 : index
    %c0_40 = arith.constant 0 : index
    %39 = vector.load %arg2[%c5, %c0_39, %c0_40] : memref<9x8x128xbf16, #tpu.memory_space<vmem>>, vector<1x8x128xbf16>
    %40 = vector.shape_cast %39 : vector<1x8x128xbf16> to vector<8x128xbf16>
    %cst_41 = arith.constant dense<0.000000e+00> : vector<256x128xf32>
    %41 = tpu.matmul %38, %40, %cst_41 {dimension_numbers = #tpu.dot_dimension_numbers<[1], [0], [0], [1], [0, 0, 1, 1], [], []>} : vector<256x8xbf16>, vector<8x128xbf16>, vector<256x128xf32> -> vector<256x128xf32>
    %42 = arith.addf %35, %41 : vector<256x128xf32>
    %c0_42 = arith.constant 0 : index
    %c2_43 = arith.constant 2 : index
    %c0_44 = arith.constant 0 : index
    %c0_45 = arith.constant 0 : index
    %43 = vector.load %arg1[%c0_42, %c2_43, %c0_44, %c0_45] : memref<1x18x18x8xbf16, #tpu.memory_space<vmem>>, vector<1x16x16x8xbf16>
    %44 = vector.shape_cast %43 : vector<1x16x16x8xbf16> to vector<16x16x8xbf16>
    %45 = vector.shape_cast %44 : vector<16x16x8xbf16> to vector<256x8xbf16>
    %c6 = arith.constant 6 : index
    %c0_46 = arith.constant 0 : index
    %c0_47 = arith.constant 0 : index
    %46 = vector.load %arg2[%c6, %c0_46, %c0_47] : memref<9x8x128xbf16, #tpu.memory_space<vmem>>, vector<1x8x128xbf16>
    %47 = vector.shape_cast %46 : vector<1x8x128xbf16> to vector<8x128xbf16>
    %cst_48 = arith.constant dense<0.000000e+00> : vector<256x128xf32>
    %48 = tpu.matmul %45, %47, %cst_48 {dimension_numbers = #tpu.dot_dimension_numbers<[1], [0], [0], [1], [0, 0, 1, 1], [], []>} : vector<256x8xbf16>, vector<8x128xbf16>, vector<256x128xf32> -> vector<256x128xf32>
    %49 = arith.addf %42, %48 : vector<256x128xf32>
    %c0_49 = arith.constant 0 : index
    %c2_50 = arith.constant 2 : index
    %c1_51 = arith.constant 1 : index
    %c0_52 = arith.constant 0 : index
    %50 = vector.load %arg1[%c0_49, %c2_50, %c1_51, %c0_52] : memref<1x18x18x8xbf16, #tpu.memory_space<vmem>>, vector<1x16x16x8xbf16>
    %51 = vector.shape_cast %50 : vector<1x16x16x8xbf16> to vector<16x16x8xbf16>
    %52 = vector.shape_cast %51 : vector<16x16x8xbf16> to vector<256x8xbf16>
    %c7 = arith.constant 7 : index
    %c0_53 = arith.constant 0 : index
    %c0_54 = arith.constant 0 : index
    %53 = vector.load %arg2[%c7, %c0_53, %c0_54] : memref<9x8x128xbf16, #tpu.memory_space<vmem>>, vector<1x8x128xbf16>
    %54 = vector.shape_cast %53 : vector<1x8x128xbf16> to vector<8x128xbf16>
    %cst_55 = arith.constant dense<0.000000e+00> : vector<256x128xf32>
    %55 = tpu.matmul %52, %54, %cst_55 {dimension_numbers = #tpu.dot_dimension_numbers<[1], [0], [0], [1], [0, 0, 1, 1], [], []>} : vector<256x8xbf16>, vector<8x128xbf16>, vector<256x128xf32> -> vector<256x128xf32>
    %56 = arith.addf %49, %55 : vector<256x128xf32>
    %c0_56 = arith.constant 0 : index
    %c2_57 = arith.constant 2 : index
    %c2_58 = arith.constant 2 : index
    %c0_59 = arith.constant 0 : index
    %57 = vector.load %arg1[%c0_56, %c2_57, %c2_58, %c0_59] : memref<1x18x18x8xbf16, #tpu.memory_space<vmem>>, vector<1x16x16x8xbf16>
    %58 = vector.shape_cast %57 : vector<1x16x16x8xbf16> to vector<16x16x8xbf16>
    %59 = vector.shape_cast %58 : vector<16x16x8xbf16> to vector<256x8xbf16>
    %c8 = arith.constant 8 : index
    %c0_60 = arith.constant 0 : index
    %c0_61 = arith.constant 0 : index
    %60 = vector.load %arg2[%c8, %c0_60, %c0_61] : memref<9x8x128xbf16, #tpu.memory_space<vmem>>, vector<1x8x128xbf16>
    %61 = vector.shape_cast %60 : vector<1x8x128xbf16> to vector<8x128xbf16>
    %cst_62 = arith.constant dense<0.000000e+00> : vector<256x128xf32>
    %62 = tpu.matmul %59, %61, %cst_62 {dimension_numbers = #tpu.dot_dimension_numbers<[1], [0], [0], [1], [0, 0, 1, 1], [], []>} : vector<256x8xbf16>, vector<8x128xbf16>, vector<256x128xf32> -> vector<256x128xf32>
    %63 = arith.addf %56, %62 : vector<256x128xf32>
    %c0_63 = arith.constant 0 : index
    %c0_64 = arith.constant 0 : index
    %64 = vector.load %arg3[%c0_63, %c0_64] : memref<1x128xf32, #tpu.memory_space<vmem>>, vector<1x128xf32>
    %65 = vector.broadcast %64 : vector<1x128xf32> to vector<256x128xf32>
    %66 = arith.addf %63, %65 : vector<256x128xf32>
    %cst_65 = arith.constant 0.000000e+00 : f32
    %67 = vector.broadcast %cst_65 : f32 to vector<256x128xf32>
    %68 = arith.maximumf %66, %67 : vector<256x128xf32>
    %c0_66 = arith.constant 0 : index
    %c0_67 = arith.constant 0 : index
    %c0_68 = arith.constant 0 : index
    %69 = vector.load %arg4[%c0_66, %c0_67, %c0_68] : memref<1x256x128xf32, #tpu.memory_space<vmem>>, vector<1x256x128xf32>
    %70 = vector.shape_cast %69 : vector<1x256x128xf32> to vector<256x128xf32>
    %71 = vector.shape_cast %68 : vector<256x128xf32> to vector<1x256x128xf32>
    tpu.vector_store %arg4[%c0_66, %c0_67, %c0_68], %71 {strides = array<i32>} : memref<1x256x128xf32, #tpu.memory_space<vmem>>, vector<1x256x128xf32>,
    return
  }
  func.func @transform_0(%arg0: i32) -> (i32, i32, i32, i32) {
    %c0_i32 = arith.constant 0 : i32
    %c0_i32_0 = arith.constant 0 : i32
    %c0_i32_1 = arith.constant 0 : i32
    %c0_i32_2 = arith.constant 0 : i32
    return %arg0, %c0_i32, %c0_i32_0, %c0_i32_1 : i32, i32, i32, i32
  }
  func.func @transform_1(%arg0: i32) -> (i32, i32, i32) {
    %c0_i32 = arith.constant 0 : i32
    %c0_i32_0 = arith.constant 0 : i32
    %c0_i32_1 = arith.constant 0 : i32
    %c0_i32_2 = arith.constant 0 : i32
    return %c0_i32, %c0_i32_0, %c0_i32_1 : i32, i32, i32
  }
  func.func @transform_2(%arg0: i32) -> (i32, i32) {
    %c0_i32 = arith.constant 0 : i32
    %c0_i32_0 = arith.constant 0 : i32
    %c0_i32_1 = arith.constant 0 : i32
    return %c0_i32, %c0_i32_0 : i32, i32
  }
  func.func @transform_3(%arg0: i32) -> (i32, i32, i32) {
    %c0_i32 = arith.constant 0 : i32
    %c0_i32_0 = arith.constant 0 : i32
    %c0_i32_1 = arith.constant 0 : i32
    return %arg0, %c0_i32, %c0_i32_0 : i32, i32, i32
  }
}

</mosaic_0001>

<bundles_post_ra>
// kernel: a_call__.1
= control target key start
LH: loop header
LB: loop body
LE: loop exit
PB: predicated region body
PF: predicated region fallthrough
CT: control target
= control target key end

     0   :  { %s6306_s12 = smov 0   ;;  %s8107_s0 = inlined_call_operand.vmem [shape: bf16[2,18,18,8], index: 0, kind: input, shape index: {}]   ;;  %s8108_s1 = inlined_call_operand.vmem [shape: bf16[9,8,128], index: 1, kind: input, shape index: {}]   ;;  %s8109_s2 = inlined_call_operand.vmem [shape: f32[1,128], index: 2, kind: input, shape index: {}]   ;;  %s8110_s3 = inlined_call_operand.vmem [shape: f32[2,256,128], index: 3, kind: output, shape index: {}]  }
   0x1 LB: > { %s4889_s13 = sadd.s32 4294967295, %s6284_s12   ;;  %p4893_p0 = scmp.ge.s32.totalorder %s6284_s12, 1  ;;  %s6284_s12 = sphi %s6306_s12, %s13_s12  }
   0x2   : > { %p137_p1 = scmp.lt.s32.totalorder %s6284_s12, 3 }
   0x4   : > { %p138_p2 = pnand %p4893_p0, %p137_p1 }
   0x6   : > { %141 = sbr.rel (%p138_p2) target bundleno = 587 (0x24b), region = 32 }
   0xd   : > { %v4897_v0 = vld [vmem:[%s8108_s1 + $0x4] sm:$0xf]  ;;  %vm707_vm0 = vcmask 1043456   ;;  %v5124_v1 = vld [vmem:[%s8108_s1 + $0x10] sm:$0xf]  ;;  %p161_p3 = scmp.lt.s32.totalorder %s4889_s13, 1 }
   0xe   : > { %6154 = vmatprep.subr.msk.bf16.mxu1 %vm707_vm0, %v4897_v0  ;;  %6158 = vmatprep.subr.msk.bf16.mxu0 %vm707_vm0, %v5124_v1  ;;  %v709_v2 = vsel %vm707_vm0, %v4897_v0, 0  ;;  %v6324_v3 = vsel %vm707_vm0, %v5124_v1, 0  ;;  %v204_v4 = vld [vmem:[%s8108_s1] sm:$0xf]  ;;  %v5189_v5 = vld [vmem:[%s8108_s1 + $0x14] sm:$0xf] }
   0xf   : > { %8124 = vst [vmem:[#allocation2_spill] sm:$0xff] %v6324_v3  ;;  %5591 = vmatpush3.bf16.msra.mxu1 %v709_v2  ;;  %5727 = vmatpush3.bf16.msra.mxu0 %v6324_v3  ;;  %s8179_s13 = smov (!%p161_p3, %s4889_s13), 1  ;;  %vm221_vm1 = vsmask.f32 3328  ;;  %vm222_vm2 = vsmask.f32 7440 }
  0x10   : > { %6155 = vmatprep.subr.msk.bf16.mxu1 %vm707_vm0, %v204_v4  ;;  %6160 = vmatprep.subr.msk.bf16.mxu0 %vm707_vm0, %v5189_v5  ;;  %s6164_s22 = smul.u32 216, %s8179_s13  ;;  %vm658_vm3 = vcmask 64512   ;;  %v6354_v17 = vsel %vm707_vm0, %v204_v4, 0  ;;  %v6360_v26 = vld [vmem:[%s8108_s1 + $0x18] sm:$0xf]  ;;  %vm6367_vm4 = vmor %vm221_vm1, %vm222_vm2  ;;  %v6373_v37 = vsel %vm707_vm0, %v5189_v5, 0 }
  0x11   : > { %v6377_v41 = vsel %vm707_vm0, %v6360_v26, 0  ;;  %vm1212_vm5 = vcmask 1042432   ;;  %vm1213_vm6 = vcmask 1046532   ;;  %s5436_s17 = sshll.u32 %s8179_s13, 8 }
  0x12   : > { %s6341_s25 = scalar_lea.vmem %s8107_s0, %s6164_s22  ;;  %vm6593_vm7 = vmor %vm1212_vm5, %vm1213_vm6  ;;  %s8035_s20 = scalar_lea.vmem %s8110_s3, %s5436_s17 }
  0x13   : > { %v172_v6 = vld [vmem:[%s6341_s25] sm:$0xf]  ;;  %v173_v7 = vld [vmem:[%s6341_s25 + $0x4] sm:$0xf]  ;;  %v205_v8 = vld [vmem:[%s6341_s25 + $0x8] sm:$0x1] }
  0x14   : > { %v225_v9 = vshrl.u32 %v172_v6, 16  ;;  %v228_v10 = vshll.u32 %v172_v6, 16  ;;  %v234_v11 = vshll.u32 %v173_v7, 16  ;;  %v238_v12 = vshrl.u32 %v173_v7, 16  ;;  %v5076_v13 = vld [vmem:[%s6341_s25 + $0xc] sm:$0xf] }
  0x15   : > { %v244_v14 = vshll.u32 %v205_v8, 16  ;;  %v6348_v15 = vld [vmem:[%s6341_s25 + $0x10] sm:$0xf]  ;;  %v6351_v16 = vld [vmem:[%s6341_s25 + $0x14] sm:$0x1]  ;;  %v2029_v23 = vshrl.u32 %v5076_v13, 16 }
  0x16   : > { %v227_v18 = vrot.slane %v225_v9, 4  ;;  %v230_v19 = vrot.slane %v228_v10, 5  ;;  %v236_v20 = vrot.slane %v234_v11, 5  ;;  %v240_v21 = vrot.slane %v238_v12, 4  ;;  %v174_v31 = vld [vmem:[%s6341_s25 + $0xc] sm:$0xf] }
  0x17   : > { %v246_v22 = vrot.slane %v244_v14, 5  ;;  %v2032_v24 = vshll.u32 %v5076_v13, 16  ;;  %v2038_v25 = vshll.u32 %v6348_v15, 16  ;;  %v2042_v29 = vshrl.u32 %v6348_v15, 16  ;;  %v175_v36 = vld [vmem:[%s6341_s25 + $0x10] sm:$0xf] }
  0x18   : > { %v231_v27 = vor.u32 %v230_v19, %v227_v18  ;;  %v241_v28 = vor.u32 %v240_v21, %v236_v20  ;;  %v2048_v30 = vshll.u32 %v6351_v16, 16  ;;  %v2031_v33 = vrot.slane %v2029_v23, 4  ;;  %v206_v44 = vld [vmem:[%s6341_s25 + $0x14] sm:$0x1]  ;;  %v5079_v55 = vld [vmem:[%s6341_s25 + $0x18] sm:$0xf] }
  0x19   : > { %v2034_v34 = vrot.slane %v2032_v24, 5  ;;  %v2040_v35 = vrot.slane %v2038_v25, 5  ;;  %v2044_v40 = vrot.slane %v2042_v29, 4  ;;  %v249_v45 = vshrl.u32 %v174_v31, 16  ;;  %v6386_v60 = vld [vmem:[%s6341_s25 + $0x1c] sm:$0xf] }
  0x1a   : > { %v232_v38 = vrot.slane %v231_v27, 4  ;;  %v242_v39 = vrot.slane %v241_v28, 4  ;;  %v2050_v43 = vrot.slane %v2048_v30, 5  ;;  %v252_v46 = vshll.u32 %v174_v31, 16  ;;  %v6394_v1 = vld [vmem:[%s6341_s25 + $0x20] sm:$0x1] }
  0x1b   : > { %v2035_v42 = vor.u32 %v2034_v34, %v2031_v33  ;;  %v2045_v49 = vor.u32 %v2044_v40, %v2040_v35  ;;  %v258_v50 = vshll.u32 %v175_v36, 16  ;;  %v251_v53 = vrot.slane %v249_v45, 4  ;;  %v176_v18 = vld [vmem:[%s6341_s25 + $0x18] sm:$0xf]  ;;  %v177_v23 = vld [vmem:[%s6341_s25 + $0x1c] sm:$0xf] }
  0x1c   : > { %v237_v47 = vsel %vm6367_vm4, %v232_v38, %v236_v20  ;;  %v247_v48 = vsel %vm6367_vm4, %v242_v39, %v246_v22  ;;  %v254_v54 = vrot.slane %v252_v46, 5  ;;  %v262_v58 = vshrl.u32 %v175_v36, 16  ;;  %v207_v31 = vld [vmem:[%s6341_s25 + $0x20] sm:$0x1]  ;;  %v5082_v40 = vld [vmem:[%s6341_s25 + $0x24] sm:$0xf] }
  0x1d   : > { %v4898_v51 = vcombine.low %v237_v47, %v247_v48  ;;  %v2036_v52 = vrot.slane %v2035_v42, 4  ;;  %v2046_v56 = vrot.slane %v2045_v49, 4  ;;  %v260_v57 = vrot.slane %v258_v50, 5  ;;  %v6417_v46 = vld [vmem:[%s6341_s25 + $0x28] sm:$0xf] }
  0x1e   : > { %v268_v59 = vshll.u32 %v206_v44, 16  ;;  %v2772_v62 = vrot.slane %v6348_v15, 5  ;;  %v2775_v63 = vrot.slane %v6351_v16, 5  ;;  %v255_v0 = vor.u32 %v254_v54, %v251_v53  ;;  %v6426_v54 = vld [vmem:[%s6341_s25 + $0x2c] sm:$0x1] }
  0x1f   : > { %5592 = vmatprep.mubr.msk.bf16.mxu1 %vm658_vm3, %v4898_v51  ;;  %v2041_v61 = vsel %vm6367_vm4, %v2036_v52, %v2040_v35  ;;  %v2051_v2 = vsel %vm6367_vm4, %v2046_v56, %v2050_v43  ;;  %v264_v4 = vrot.slane %v262_v58, 4  ;;  %v2053_v6 = vshrl.u32 %v5079_v55, 16  ;;  %v4978_v51 = vld [vmem:[%s8108_s1 + $0x8] sm:$0xf]  ;;  %v6626_v16 = vld [vmem:[%s6341_s25 + $0x7c] sm:$0xf] }
  0x20   : > { %v270_v5 = vrot.slane %v268_v59, 5  ;;  %v5125_v7 = vcombine.low %v2041_v61, %v2051_v2  ;;  %v256_v8 = vrot.slane %v255_v0, 4  ;;  %v2056_v9 = vshll.u32 %v5079_v55, 16  ;;  %v178_v0 = vld [vmem:[%s6341_s25 + $0x24] sm:$0xf] }
  0x21   : > { %v2062_v10 = vshll.u32 %v6386_v60, 16  ;;  %v265_v11 = vor.u32 %v264_v4, %v260_v57  ;;  %v2055_v12 = vrot.slane %v2053_v6, 4  ;;  %v2066_v13 = vshrl.u32 %v6386_v60, 16 }
  0x22   : > { %v2072_v14 = vshll.u32 %v6394_v1, 16  ;;  %5728 = vmatprep.mubr.msk.bf16.mxu0 %vm658_vm3, %v5125_v7  ;;  %v261_v19 = vsel %vm6367_vm4, %v256_v8, %v260_v57  ;;  %v2058_v20 = vrot.slane %v2056_v9, 5  ;;  %v2779_v22 = vrot.slane %v6386_v60, 5  ;;  %v179_v7 = vld [vmem:[%s6341_s25 + $0x28] sm:$0xf] }
  0x23   : > { %v2064_v21 = vrot.slane %v2062_v10, 5  ;;  %v266_v24 = vrot.slane %v265_v11, 4  ;;  %v2068_v25 = vrot.slane %v2066_v13, 4  ;;  %v2782_v28 = vrot.slane %v6394_v1, 5  ;;  %v208_v13 = vld [vmem:[%s6341_s25 + $0x2c] sm:$0x1] }
  0x24   : > { %v2074_v27 = vrot.slane %v2072_v14, 5  ;;  %v2059_v29 = vor.u32 %v2058_v20, %v2055_v12  ;;  %v6410_v30 = vrot.slane %v2779_v22, 4  ;;  %v273_v33 = vshrl.u32 %v176_v18, 16 }
  0x25   : > { %v276_v34 = vshll.u32 %v176_v18, 16  ;;  %v271_v35 = vsel %vm6367_vm4, %v266_v24, %v270_v5  ;;  %v2069_v36 = vor.u32 %v2068_v25, %v2064_v21  ;;  %v282_v38 = vshll.u32 %v177_v23, 16  ;;  %v5085_v24 = vld [vmem:[%s6341_s25 + $0x30] sm:$0xf] }
  0x26   : > { %v286_v39 = vshrl.u32 %v177_v23, 16  ;;  %v4899_v42 = vcombine.low %v261_v19, %v271_v35  ;;  %v2060_v43 = vrot.slane %v2059_v29, 4  ;;  %v275_v44 = vrot.slane %v273_v33, 4  ;;  %v6446_v33 = vld [vmem:[%s6341_s25 + $0x34] sm:$0xf] }
  0x27   : > { %v278_v45 = vrot.slane %v276_v34, 5  ;;  %v2070_v47 = vrot.slane %v2069_v36, 4  ;;  %v284_v48 = vrot.slane %v282_v38, 5  ;;  %v292_v50 = vshll.u32 %v207_v31, 16 }
  0x28   : > { %v288_v49 = vrot.slane %v286_v39, 4  ;;  %5593 = vmatmul.mubr.msk.bf16.vlgmr.msra.gmra.mrb[0].mxu1 %vm658_vm3, %v4899_v42  ;;  %v2065_v52 = vsel %vm6367_vm4, %v2060_v43, %v2064_v21  ;;  %v2077_v55 = vshrl.u32 %v5082_v40, 16  ;;  %v2080_v56 = vshll.u32 %v5082_v40, 16  ;;  %v6454_v40 = vld [vmem:[%s6341_s25 + $0x38] sm:$0x1] }
  0x29   : > { %v279_v53 = vor.u32 %v278_v45, %v275_v44  ;;  %5625 = vmatpush3.bf16.msra.mxu1 %v6354_v17  ;;  %v2075_v57 = vsel %vm6367_vm4, %v2070_v47, %v2074_v27  ;;  %v294_v59 = vrot.slane %v292_v50, 5  ;;  %v2086_v61 = vshll.u32 %v6417_v46, 16 }
  0x2a   : > { %v289_v58 = vor.u32 %v288_v49, %v284_v48  ;;  %v5126_v2 = vcombine.low %v2065_v52, %v2075_v57  ;;  %v2079_v5 = vrot.slane %v2077_v55, 4  ;;  %v2082_v6 = vrot.slane %v2080_v56, 5  ;;  %6156 = vmatprep.subr.msk.bf16.mxu1 %vm707_vm0, %v4978_v51  ;;  %v180_v52 = vld [vmem:[%s6341_s25 + $0x30] sm:$0xf] }
  0x2b   : > { %v280_v4 = vrot.slane %v279_v53, 4  ;;  %v2088_v9 = vrot.slane %v2086_v61, 5  ;;  %v2090_v17 = vshrl.u32 %v6417_v46, 16  ;;  %v2096_v10 = vshll.u32 %v6426_v54, 16 }
  0x2c   : > { %v290_v8 = vrot.slane %v289_v58, 4  ;;  %5729 = vmatmul.mubr.msk.bf16.vlgmr.msra.gmra.mrb[0].mxu0 %vm658_vm3, %v5126_v2  ;;  %v2083_v12 = vor.u32 %v2082_v6, %v2079_v5  ;;  %v297_v14 = vshrl.u32 %v178_v0, 16  ;;  %v300_v18 = vshll.u32 %v178_v0, 16  ;;  %v181_v58 = vld [vmem:[%s6341_s25 + $0x34] sm:$0xf] }
  0x2d   : > { %v285_v11 = vsel %vm6367_vm4, %v280_v4, %v284_v48  ;;  %5761 = vmatpush3.bf16.msra.mxu0 %v6373_v37  ;;  %v2092_v20 = vrot.slane %v2090_v17, 4  ;;  %v2098_v21 = vrot.slane %v2096_v10, 5  ;;  %v306_v23 = vshll.u32 %v179_v7, 16  ;;  %v209_v4 = vld [vmem:[%s6341_s25 + $0x38] sm:$0x1] }
  0x2e   : > { %v295_v19 = vsel %vm6367_vm4, %v290_v8, %v294_v59  ;;  %v2084_v27 = vrot.slane %v2083_v12, 4  ;;  %v299_v29 = vrot.slane %v297_v14, 4  ;;  %v302_v31 = vrot.slane %v300_v18, 5  ;;  %6161 = vmatprep.subr.msk.bf16.mxu0 %vm707_vm0, %v6360_v26  ;;  %v5088_v12 = vld [vmem:[%s6341_s25 + $0x3c] sm:$0xf] }
  0x2f   : > { %v4900_v25 = vcombine.low %v285_v11, %v295_v19  ;;  %v2093_v34 = vor.u32 %v2092_v20, %v2088_v9  ;;  %v308_v35 = vrot.slane %v306_v23, 5  ;;  %v310_v37 = vshrl.u32 %v179_v7, 16  ;;  %v6471_v20 = vld [vmem:[%s6341_s25 + $0x40] sm:$0xf] }
  0x30   : > { %v316_v36 = vshll.u32 %v208_v13, 16  ;;  %v2089_v38 = vsel %vm6367_vm4, %v2084_v27, %v2088_v9  ;;  %v303_v39 = vor.u32 %v302_v31, %v299_v29  ;;  %v2101_v42 = vshrl.u32 %v5085_v24, 16 }
  0x31   : > { %5596 = vmatprep.mubr.msk.bf16.mxu1 %vm658_vm3, %v4900_v25  ;;  %v2104_v43 = vshll.u32 %v5085_v24, 16  ;;  %v2094_v44 = vrot.slane %v2093_v34, 4  ;;  %v312_v45 = vrot.slane %v310_v37, 4  ;;  %v2110_v26 = vshll.u32 %v6446_v33, 16  ;;  %v6476_v34 = vld [vmem:[%s6341_s25 + $0x44] sm:$0x1] }
  0x32   : > { %v318_v47 = vrot.slane %v316_v36, 5  ;;  %v304_v48 = vrot.slane %v303_v39, 4  ;;  %v2103_v49 = vrot.slane %v2101_v42, 4  ;;  %v2114_v51 = vshrl.u32 %v6446_v33, 16  ;;  %v182_v42 = vld [vmem:[%s6341_s25 + $0x3c] sm:$0xf] }
  0x33   : > { %v2106_v50 = vrot.slane %v2104_v43, 5  ;;  %v2099_v53 = vsel %vm6367_vm4, %v2094_v44, %v2098_v21  ;;  %v313_v55 = vor.u32 %v312_v45, %v308_v35  ;;  %v2112_v56 = vrot.slane %v2110_v26, 5  ;;  %v183_v26 = vld [vmem:[%s6341_s25 + $0x40] sm:$0xf] }
  0x34   : > { %v2120_v57 = vshll.u32 %v6454_v40, 16  ;;  %v5127_v59 = vcombine.low %v2089_v38, %v2099_v53  ;;  %v309_v61 = vsel %vm6367_vm4, %v304_v48, %v308_v35  ;;  %v2116_v2 = vrot.slane %v2114_v51, 4 }
  0x35   : > { %v2107_v0 = vor.u32 %v2106_v50, %v2103_v49  ;;  %v314_v5 = vrot.slane %v313_v55, 4  ;;  %v321_v7 = vshrl.u32 %v180_v52, 16  ;;  %v324_v8 = vshll.u32 %v180_v52, 16 }
  0x36   : > { %v2122_v6 = vrot.slane %v2120_v57, 5  ;;  %5732 = vmatprep.mubr.msk.bf16.mxu0 %vm658_vm3, %v5127_v59  ;;  %v2117_v17 = vor.u32 %v2116_v2, %v2112_v56  ;;  %v330_v10 = vshll.u32 %v181_v58, 16  ;;  %v334_v11 = vshrl.u32 %v181_v58, 16  ;;  %v5091_v2 = vld [vmem:[%s6341_s25 + $0x48] sm:$0xf] }
  0x37   : > { %v2108_v9 = vrot.slane %v2107_v0, 4  ;;  %v319_v13 = vsel %vm6367_vm4, %v314_v5, %v318_v47  ;;  %v323_v14 = vrot.slane %v321_v7, 4  ;;  %v326_v18 = vrot.slane %v324_v8, 5  ;;  %v6494_v8 = vld [vmem:[%s6341_s25 + $0x4c] sm:$0xf] }
  0x38   : > { %v340_v19 = vshll.u32 %v209_v4, 16  ;;  %v4901_v21 = vcombine.low %v309_v61, %v319_v13  ;;  %v2118_v24 = vrot.slane %v2117_v17, 4  ;;  %v332_v25 = vrot.slane %v330_v10, 5  ;;  %v210_v61 = vld [vmem:[%s6341_s25 + $0x44] sm:$0x1] }
  0x39   : > { %v2113_v23 = vsel %vm6367_vm4, %v2108_v9, %v2112_v56  ;;  %v327_v27 = vor.u32 %v326_v18, %v323_v14  ;;  %v336_v29 = vrot.slane %v334_v11, 4  ;;  %v2125_v35 = vshrl.u32 %v5088_v12, 16 }
  0x3a   : > { %v342_v31 = vrot.slane %v340_v19, 5  ;;  %5597 = vmatmul.mubr.msk.bf16.gmra.mrb[4].mxu1 %vm658_vm3, %v4901_v21  ;;  %v2123_v37 = vsel %vm6367_vm4, %v2118_v24, %v2122_v6  ;;  %v2128_v36 = vshll.u32 %v5088_v12, 16  ;;  %v2134_v38 = vshll.u32 %v6471_v20, 16 }
  0x3b   : > { %v2138_v39 = vshrl.u32 %v6471_v20, 16  ;;  %v5128_v43 = vcombine.low %v2113_v23, %v2123_v37  ;;  %v328_v44 = vrot.slane %v327_v27, 4  ;;  %v337_v45 = vor.u32 %v336_v29, %v332_v25  ;;  %v6502_v23 = vld [vmem:[%s6341_s25 + $0x50] sm:$0x1]  ;;  %v6506_v27 = vld [vmem:[%s6341_s25 + $0x48] sm:$0xf] }
  0x3c   : > { %v2127_v47 = vrot.slane %v2125_v35, 4  ;;  %v2130_v48 = vrot.slane %v2128_v36, 5  ;;  %v2136_v49 = vrot.slane %v2134_v38, 5  ;;  %v2144_v51 = vshll.u32 %v6476_v34, 16  ;;  %v6509_v36 = vld [vmem:[%s6341_s25 + $0x4c] sm:$0xf] }
  0x3d   : > { %v2140_v50 = vrot.slane %v2138_v39, 4  ;;  %5733 = vmatmul.mubr.msk.bf16.gmra.mrb[4].mxu0 %vm658_vm3, %v5128_v43  ;;  %v333_v52 = vsel %vm6367_vm4, %v328_v44, %v332_v25  ;;  %v338_v53 = vrot.slane %v337_v45, 4  ;;  %v345_v55 = vshrl.u32 %v182_v42, 16 }
  0x3e   : > { %v348_v56 = vshll.u32 %v182_v42, 16  ;;  %v2131_v57 = vor.u32 %v2130_v48, %v2127_v47  ;;  %v2146_v59 = vrot.slane %v2144_v51, 5  ;;  %v354_v0 = vshll.u32 %v183_v26, 16 }
  0x3f   : > { %v2141_v58 = vor.u32 %v2140_v50, %v2136_v49  ;;  %v343_v4 = vsel %vm6367_vm4, %v338_v53, %v342_v31  ;;  %v347_v5 = vrot.slane %v345_v55, 4  ;;  %v358_v7 = vshrl.u32 %v183_v26, 16  ;;  %v211_v26 = vld [vmem:[%s6341_s25 + $0x50] sm:$0x1]  ;;  %v5094_v53 = vld [vmem:[%s6341_s25 + $0x54] sm:$0xf] }
  0x40   : > { %v350_v6 = vrot.slane %v348_v56, 5  ;;  %v4902_v9 = vcombine.low %v333_v52, %v343_v4  ;;  %v2132_v17 = vrot.slane %v2131_v57, 4  ;;  %v356_v11 = vrot.slane %v354_v0, 5  ;;  %v6525_v4 = vld [vmem:[%s6341_s25 + $0x58] sm:$0xf] }
  0x41   : > { %v2142_v10 = vrot.slane %v2141_v58, 4  ;;  %v360_v13 = vrot.slane %v358_v7, 4  ;;  %v364_v14 = vshll.u32 %v210_v61, 16  ;;  %v2149_v18 = vshrl.u32 %v5091_v2, 16 }
  0x42   : > { %v351_v12 = vor.u32 %v350_v6, %v347_v5  ;;  %5600 = vmatprep.mubr.msk.bf16.mxu1 %vm658_vm3, %v4902_v9  ;;  %v2137_v19 = vsel %vm6367_vm4, %v2132_v17, %v2136_v49  ;;  %v2152_v24 = vshll.u32 %v5091_v2, 16  ;;  %v2158_v25 = vshll.u32 %v6494_v8, 16 }
  0x43   : > { %v2147_v21 = vsel %vm6367_vm4, %v2142_v10, %v2146_v59  ;;  %v361_v35 = vor.u32 %v360_v13, %v356_v11  ;;  %v366_v37 = vrot.slane %v364_v14, 5  ;;  %v2151_v38 = vrot.slane %v2149_v18, 4 }
  0x44   : > { %v5129_v29 = vcombine.low %v2137_v19, %v2147_v21  ;;  %v352_v31 = vrot.slane %v351_v12, 4  ;;  %v2154_v39 = vrot.slane %v2152_v24, 5  ;;  %v2160_v42 = vrot.slane %v2158_v25, 5  ;;  %v6531_v12 = vld [vmem:[%s6341_s25 + $0x5c] sm:$0x1] }
  0x45   : > { %v2162_v43 = vshrl.u32 %v6494_v8, 16  ;;  %v362_v45 = vrot.slane %v361_v35, 4  ;;  %v2168_v47 = vshll.u32 %v6502_v23, 16  ;;  %v369_v48 = vshrl.u32 %v6506_v27, 16  ;;  %v6535_v24 = vld [vmem:[%s6341_s25 + $0x54] sm:$0xf] }
  0x46   : > { %5736 = vmatprep.mubr.msk.bf16.mxu0 %vm658_vm3, %v5129_v29  ;;  %v357_v44 = vsel %vm6367_vm4, %v352_v31, %v356_v11  ;;  %v2155_v49 = vor.u32 %v2154_v39, %v2151_v38  ;;  %v372_v51 = vshll.u32 %v6506_v27, 16  ;;  %v378_v52 = vshll.u32 %v6509_v36, 16 }
  0x47   : > { %v2164_v50 = vrot.slane %v2162_v43, 4  ;;  %v367_v55 = vsel %vm6367_vm4, %v362_v45, %v366_v37  ;;  %v2170_v56 = vrot.slane %v2168_v47, 5  ;;  %v371_v57 = vrot.slane %v369_v48, 4  ;;  %v6541_v37 = vld [vmem:[%s6341_s25 + $0x58] sm:$0xf] }
  0x48   : > { %v382_v58 = vshrl.u32 %v6509_v36, 16  ;;  %v4903_v59 = vcombine.low %v357_v44, %v367_v55  ;;  %v2156_v61 = vrot.slane %v2155_v49, 4  ;;  %v374_v2 = vrot.slane %v372_v51, 5 }
  0x49   : > { %v2165_v0 = vor.u32 %v2164_v50, %v2160_v42  ;;  %v380_v5 = vrot.slane %v378_v52, 5  ;;  %v388_v7 = vshll.u32 %v211_v26, 16  ;;  %v2173_v9 = vshrl.u32 %v5094_v53, 16  ;;  %v212_v26 = vld [vmem:[%s6341_s25 + $0x5c] sm:$0x1] }
  0x4a   : > { %v384_v6 = vrot.slane %v382_v58, 4  ;;  %5601 = vmatmul.mubr.msk.bf16.gmra.mrb[8].mxu1 %vm658_vm3, %v4903_v59  ;;  %v2161_v17 = vsel %vm6367_vm4, %v2156_v61, %v2160_v42  ;;  %v375_v11 = vor.u32 %v374_v2, %v371_v57  ;;  %v2176_v13 = vshll.u32 %v5094_v53, 16  ;;  %v5097_v53 = vld [vmem:[%s6341_s25 + $0x60] sm:$0xf]  ;;  %v6555_v59 = vld [vmem:[%s6341_s25 + $0x64] sm:$0xf] }
  0x4b   : > { %v2166_v10 = vrot.slane %v2165_v0, 4  ;;  %v390_v18 = vrot.slane %v388_v7, 5  ;;  %v2175_v19 = vrot.slane %v2173_v9, 4  ;;  %v2182_v21 = vshll.u32 %v6525_v4, 16  ;;  %v6562_v9 = vld [vmem:[%s6341_s25 + $0x68] sm:$0x1] }
  0x4c   : > { %v385_v14 = vor.u32 %v384_v6, %v380_v5  ;;  %v376_v29 = vrot.slane %v375_v11, 4  ;;  %v2178_v31 = vrot.slane %v2176_v13, 5  ;;  %v2186_v35 = vshrl.u32 %v6525_v4, 16 }
  0x4d   : > { %v2171_v25 = vsel %vm6367_vm4, %v2166_v10, %v2170_v56  ;;  %v2184_v42 = vrot.slane %v2182_v21, 5  ;;  %v2192_v43 = vshll.u32 %v6531_v12, 16  ;;  %v393_v48 = vshrl.u32 %v6535_v24, 16 }
  0x4e   : > { %v5130_v38 = vcombine.low %v2161_v17, %v2171_v25  ;;  %v386_v39 = vrot.slane %v385_v14, 4  ;;  %v381_v44 = vsel %vm6367_vm4, %v376_v29, %v380_v5  ;;  %v2179_v45 = vor.u32 %v2178_v31, %v2175_v19  ;;  %v6566_v19 = vld [vmem:[%s6341_s25 + $0x60] sm:$0xf] }
  0x4f   : > { %v2188_v47 = vrot.slane %v2186_v35, 4  ;;  %v2194_v50 = vrot.slane %v2192_v43, 5  ;;  %v396_v51 = vshll.u32 %v6535_v24, 16  ;;  %v402_v52 = vshll.u32 %v6541_v37, 16  ;;  %v6572_v35 = vld [vmem:[%s6341_s25 + $0x64] sm:$0xf] }
  0x50   : > { %5737 = vmatmul.mubr.msk.bf16.gmra.mrb[8].mxu0 %vm658_vm3, %v5130_v38  ;;  %v391_v49 = vsel %vm6367_vm4, %v386_v39, %v390_v18  ;;  %v2180_v56 = vrot.slane %v2179_v45, 4  ;;  %v395_v58 = vrot.slane %v393_v48, 4  ;;  %v406_v2 = vshrl.u32 %v6541_v37, 16 }
  0x51   : > { %v4904_v55 = vcombine.low %v381_v44, %v391_v49  ;;  %v2189_v57 = vor.u32 %v2188_v47, %v2184_v42  ;;  %v398_v61 = vrot.slane %v396_v51, 5  ;;  %v404_v0 = vrot.slane %v402_v52, 5 }
  0x52   : > { %v412_v5 = vshll.u32 %v212_v26, 16  ;;  %v2185_v6 = vsel %vm6367_vm4, %v2180_v56, %v2184_v42  ;;  %v2197_v17 = vshrl.u32 %v5097_v53, 16  ;;  %v2200_v10 = vshll.u32 %v5097_v53, 16 }
  0x53   : > { %5604 = vmatprep.mubr.msk.bf16.mxu1 %vm658_vm3, %v4904_v55  ;;  %v2190_v7 = vrot.slane %v2189_v57, 4  ;;  %v399_v11 = vor.u32 %v398_v61, %v395_v58  ;;  %v408_v13 = vrot.slane %v406_v2, 4  ;;  %v2206_v18 = vshll.u32 %v6555_v59, 16  ;;  %v5157_v58 = vld [vmem:[%s6341_s25 + $0xc] sm:$0xe] }
  0x54   : > { %v414_v14 = vrot.slane %v412_v5, 5  ;;  %v2199_v25 = vrot.slane %v2197_v17, 4  ;;  %v2202_v29 = vrot.slane %v2200_v10, 5  ;;  %v2210_v31 = vshrl.u32 %v6555_v59, 16 }
  0x55   : > { %v2195_v21 = vsel %vm6367_vm4, %v2190_v7, %v2194_v50  ;;  %v400_v39 = vrot.slane %v399_v11, 4  ;;  %v409_v42 = vor.u32 %v408_v13, %v404_v0  ;;  %v2208_v43 = vrot.slane %v2206_v18, 5  ;;  %v213_v50 = vld [vmem:[%s6341_s25 + $0x68] sm:$0x1] }
  0x56   : > { %v5131_v38 = vcombine.low %v2185_v6, %v2195_v21  ;;  %v2203_v44 = vor.u32 %v2202_v29, %v2199_v25  ;;  %v2212_v45 = vrot.slane %v2210_v31, 4  ;;  %v2216_v47 = vshll.u32 %v6562_v9, 16  ;;  %v6600_v29 = vld [vmem:[%s6341_s25 + $0x70] sm:$0xf] }
  0x57   : > { %v417_v26 = vshrl.u32 %v6566_v19, 16  ;;  %v405_v48 = vsel %vm6367_vm4, %v400_v39, %v404_v0  ;;  %v410_v49 = vrot.slane %v409_v42, 4  ;;  %v420_v51 = vshll.u32 %v6566_v19, 16  ;;  %v6587_v0 = vld [vmem:[%s6341_s25 + $0x6c] sm:$0xf] }
  0x58   : > { %5740 = vmatprep.mubr.msk.bf16.mxu0 %vm658_vm3, %v5131_v38  ;;  %v426_v52 = vshll.u32 %v6572_v35, 16  ;;  %v2204_v53 = vrot.slane %v2203_v44, 4  ;;  %v2213_v55 = vor.u32 %v2212_v45, %v2208_v43  ;;  %v2218_v56 = vrot.slane %v2216_v47, 5 }
  0x59   : > { %v419_v57 = vrot.slane %v417_v26, 4  ;;  %v415_v61 = vsel %vm6367_vm4, %v410_v49, %v414_v14  ;;  %v422_v2 = vrot.slane %v420_v51, 5  ;;  %v430_v6 = vshrl.u32 %v6572_v35, 16  ;;  %v214_v26 = vld [vmem:[%s6341_s25 + $0x74] sm:$0x1] }
  0x5a   : > { %v428_v5 = vrot.slane %v426_v52, 5  ;;  %v4905_v7 = vcombine.low %v405_v48, %v415_v61  ;;  %v2209_v17 = vsel %vm6367_vm4, %v2204_v53, %v2208_v43  ;;  %v2214_v10 = vrot.slane %v2213_v55, 4  ;;  %v5158_v48 = vld [vmem:[%s6341_s25 + $0x18] sm:$0xe] }
  0x5b   : > { %v436_v11 = vshll.u32 %v213_v50, 16  ;;  %v423_v14 = vor.u32 %v422_v2, %v419_v57  ;;  %v432_v18 = vrot.slane %v430_v6, 4  ;;  %v5173_v21 = vrot.slane %v5157_v58, 9  ;;  %v6619_v53 = vld [vmem:[%s6341_s25 + $0x78] sm:$0xf] }
  0x5c   : > { %v2774_v25 = vrot.slane %v2772_v62, 4  ;;  %5605 = vmatmul.mubr.msk.bf16.gmra.mrb[12].mxu1 %vm658_vm3, %v4905_v7  ;;  %v2219_v31 = vsel %vm6367_vm4, %v2214_v10, %v2218_v56  ;;  %v441_v39 = vshrl.u32 %v6587_v0, 16  ;;  %v444_v42 = vshll.u32 %v6587_v0, 16  ;;  %v215_v57 = vld [vmem:[%s6341_s25 + $0x80] sm:$0x1] }
  0x5d   : > { %v438_v38 = vrot.slane %v436_v11, 5  ;;  %v5132_v43 = vcombine.low %v2209_v17, %v2219_v31  ;;  %v424_v44 = vrot.slane %v423_v14, 4  ;;  %v433_v45 = vor.u32 %v432_v18, %v428_v5  ;;  %v5159_v10 = vld [vmem:[%s6341_s25 + $0x24] sm:$0xe] }
  0x5e   : > { %v2773_v47 = vsel %vm6593_vm7, %v5173_v21, %v2772_v62  ;;  %v2776_v49 = vsel %vm6593_vm7, %v2774_v25, %v2775_v63  ;;  %v443_v50 = vrot.slane %v441_v39, 4  ;;  %v446_v51 = vrot.slane %v444_v42, 5  ;;  %v6645_v39 = vld [vmem:[%s6341_s25 + $0x84] sm:$0xf] }
  0x5f   : > { %v450_v52 = vshll.u32 %v6600_v29, 16  ;;  %5741 = vmatmul.mubr.msk.bf16.gmra.mrb[12].mxu0 %vm658_vm3, %v5132_v43  ;;  %v429_v15 = vsel %vm6367_vm4, %v424_v44, %v428_v5  ;;  %v434_v62 = vrot.slane %v433_v45, 4  ;;  %v5190_v55 = vcombine.low %v2773_v47, %v2776_v49  ;;  %v6653_v43 = vld [vmem:[%s6341_s25 + $0x88] sm:$0xf] }
  0x60   : > { %v454_v56 = vshrl.u32 %v6600_v29, 16  ;;  %v447_v63 = vor.u32 %v446_v51, %v443_v50  ;;  %v460_v61 = vshll.u32 %v214_v26, 16  ;;  %v5174_v2 = vrot.slane %v5158_v48, 9 }
  0x61   : > { %v452_v58 = vrot.slane %v450_v52, 5  ;;  %v439_v6 = vsel %vm6367_vm4, %v434_v62, %v438_v38  ;;  %5762 = vmatprep.mubr.msk.bf16.mxu0 %vm658_vm3, %v5190_v55  ;;  %v2783_v5 = vsel %vm6593_vm7, %v6410_v30, %v2782_v28  ;;  %v465_v17 = vshrl.u32 %v6619_v53, 16  ;;  %v216_v52 = vld [vmem:[%s6341_s25 + $0x8c] sm:$0x1] }
  0x62   : > { %v456_v7 = vrot.slane %v454_v56, 4  ;;  %v4906_v11 = vcombine.low %v429_v15, %v439_v6  ;;  %v448_v14 = vrot.slane %v447_v63, 4  ;;  %v462_v18 = vrot.slane %v460_v61, 5 }
  0x63   : > { %v2780_v21 = vsel %vm6593_vm7, %v5174_v2, %v2779_v22  ;;  %v467_v38 = vrot.slane %v465_v17, 4  ;;  %v468_v1 = vshll.u32 %v6619_v53, 16  ;;  %v474_v30 = vshll.u32 %v6626_v16, 16  ;;  %v6658_v22 = vld [vmem:[%s8108_s1 + $0x1c] sm:$0xf] }
  0x64   : > { %v457_v25 = vor.u32 %v456_v7, %v452_v58  ;;  %v5191_v31 = vcombine.low %v2780_v21, %v2783_v5  ;;  %5608 = vmatprep.mubr.msk.bf16.mxu1 %vm658_vm3, %v4906_v11  ;;  %v453_v28 = vsel %vm6367_vm4, %v448_v14, %v452_v58  ;;  %v478_v60 = vshrl.u32 %v6626_v16, 16  ;;  %v6677_v5 = vld [vmem:[%s6341_s25 + $0x90] sm:$0xf] }
  0x65   : > { %v484_v42 = vshll.u32 %v215_v57, 16  ;;  %v470_v45 = vrot.slane %v468_v1, 5  ;;  %v5175_v47 = vrot.slane %v5159_v10, 9  ;;  %v2786_v26 = vrot.slane %v6417_v46, 5  ;;  %v5160_v57 = vld [vmem:[%s6341_s25 + $0x30] sm:$0xe] }
  0x66   : > { %v458_v44 = vrot.slane %v457_v25, 4  ;;  %v476_v48 = vrot.slane %v474_v30, 5  ;;  %v480_v49 = vrot.slane %v478_v60, 4  ;;  %v2789_v51 = vrot.slane %v6426_v54, 5  ;;  %v6689_v30 = vld [vmem:[%s6341_s25 + $0x94] sm:$0xf] }
  0x67   : > { %v486_v50 = vrot.slane %v484_v42, 5  ;;  %5763 = vmatmul.mubr.msk.bf16.vlgmr.msra.gmra.mrb[0].mxu0 %vm658_vm3, %v5191_v31  ;;  %v471_v62 = vor.u32 %v470_v45, %v467_v38  ;;  %v2787_v55 = vsel %vm6593_vm7, %v5175_v47, %v2786_v26  ;;  %v2788_v56 = vrot.slane %v2786_v26, 4  ;;  %v217_v60 = vld [vmem:[%s6341_s25 + $0x98] sm:$0x1]  ;;  %v5161_v26 = vld [vmem:[%s6341_s25 + $0x3c] sm:$0xe] }
  0x68   : > { %v463_v15 = vsel %vm6367_vm4, %v458_v44, %v462_v18  ;;  %5795 = vmatpush3.bf16.msra.mxu0 %v6377_v41  ;;  %v481_v46 = vor.u32 %v480_v49, %v476_v48  ;;  %v489_v58 = vshrl.u32 %v6645_v39, 16  ;;  %v492_v54 = vshll.u32 %v6645_v39, 16 }
  0x69   : > { %v4907_v63 = vcombine.low %v453_v28, %v463_v15  ;;  %v472_v61 = vrot.slane %v471_v62, 4  ;;  %v2790_v2 = vsel %vm6593_vm7, %v2788_v56, %v2789_v51  ;;  %v498_v6 = vshll.u32 %v6653_v43, 16  ;;  %6162 = vmatprep.subr.msk.bf16.mxu0 %vm707_vm0, %v6658_v22 }
  0x6a   : > { %v502_v7 = vshrl.u32 %v6653_v43, 16  ;;  %v482_v41 = vrot.slane %v481_v46, 4  ;;  %v5192_v17 = vcombine.low %v2787_v55, %v2790_v2  ;;  %v491_v10 = vrot.slane %v489_v58, 4  ;;  %v6709_v46 = vld [vmem:[%s6341_s25 + $0xa0] sm:$0xf] }
  0x6b   : > { %5609 = vmatmul.mubr.msk.bf16.gmra.mrb[16].mxu1 %vm658_vm3, %v4907_v63  ;;  %v494_v11 = vrot.slane %v492_v54, 5  ;;  %v477_v14 = vsel %vm6367_vm4, %v472_v61, %v476_v48  ;;  %v500_v18 = vrot.slane %v498_v6, 5  ;;  %v508_v25 = vshll.u32 %v216_v52, 16  ;;  %v6698_v52 = vld [vmem:[%s6341_s25 + $0x9c] sm:$0xf] }
  0x6c   : > { %v504_v21 = vrot.slane %v502_v7, 4  ;;  %v487_v31 = vsel %vm6367_vm4, %v482_v41, %v486_v50  ;;  %5766 = vmatprep.mubr.msk.bf16.mxu0 %vm658_vm3, %v5192_v17  ;;  %v5176_v1 = vrot.slane %v5160_v57, 9  ;;  %v2793_v28 = vrot.slane %v6446_v33, 5 }
  0x6d   : > { %v495_v38 = vor.u32 %v494_v11, %v491_v10  ;;  %v4908_v42 = vcombine.low %v477_v14, %v487_v31  ;;  %v510_v45 = vrot.slane %v508_v25, 5  ;;  %v2796_v47 = vrot.slane %v6454_v40, 5  ;;  %v218_v10 = vld [vmem:[%s6341_s25 + $0xa4] sm:$0x1]  ;;  %v5162_v11 = vld [vmem:[%s6341_s25 + $0x48] sm:$0xe] }
  0x6e   : > { %v505_v44 = vor.u32 %v504_v21, %v500_v18  ;;  %v2794_v49 = vsel %vm6593_vm7, %v5176_v1, %v2793_v28  ;;  %v2795_v50 = vrot.slane %v2793_v28, 4  ;;  %v513_v51 = vshrl.u32 %v6677_v5, 16 }
  0x6f   : > { %v496_v48 = vrot.slane %v495_v38, 4  ;;  %5612 = vmatprep.mubr.msk.bf16.mxu1 %vm658_vm3, %v4908_v42  ;;  %v516_v15 = vshll.u32 %v6677_v5, 16  ;;  %v522_v62 = vshll.u32 %v6689_v30, 16  ;;  %v526_v40 = vshrl.u32 %v6689_v30, 16 }
  0x70   : > { %v506_v33 = vrot.slane %v505_v44, 4  ;;  %v2797_v56 = vsel %vm6593_vm7, %v2795_v50, %v2796_v47  ;;  %v515_v57 = vrot.slane %v513_v51, 4  ;;  %v532_v63 = vshll.u32 %v217_v60, 16 }
  0x71   : > { %v501_v55 = vsel %vm6367_vm4, %v496_v48, %v500_v18  ;;  %v5193_v54 = vcombine.low %v2794_v49, %v2797_v56  ;;  %v518_v61 = vrot.slane %v516_v15, 5  ;;  %v524_v2 = vrot.slane %v522_v62, 5  ;;  %v6735_v56 = vld [vmem:[%s6341_s25 + $0xac] sm:$0xf] }
  0x72   : > { %v511_v58 = vsel %vm6367_vm4, %v506_v33, %v510_v45  ;;  %v528_v7 = vrot.slane %v526_v40, 4  ;;  %v534_v41 = vrot.slane %v532_v63, 5  ;;  %v5177_v17 = vrot.slane %v5161_v26, 9  ;;  %v6730_v33 = vld [vmem:[%s6341_s25 + $0xa8] sm:$0xf] }
  0x73   : > { %v4909_v6 = vcombine.low %v501_v55, %v511_v58  ;;  %5767 = vmatmul.mubr.msk.bf16.gmra.mrb[4].mxu0 %vm658_vm3, %v5193_v54  ;;  %v519_v14 = vor.u32 %v518_v61, %v515_v57  ;;  %v2800_v18 = vrot.slane %v6471_v20, 5  ;;  %v2803_v21 = vrot.slane %v6476_v34, 5  ;;  %v219_v61 = vld [vmem:[%s6341_s25 + $0xb0] sm:$0x1] }
  0x74   : > { %v537_v25 = vshrl.u32 %v6698_v52, 16  ;;  %v529_v31 = vor.u32 %v528_v7, %v524_v2  ;;  %v540_v38 = vshll.u32 %v6698_v52, 16  ;;  %v546_v1 = vshll.u32 %v6709_v46, 16 }
  0x75   : > { %5613 = vmatmul.mubr.msk.bf16.gmra.mrb[20].mxu1 %vm658_vm3, %v4909_v6  ;;  %v550_v28 = vshrl.u32 %v6709_v46, 16  ;;  %v520_v60 = vrot.slane %v519_v14, 4  ;;  %v2801_v42 = vsel %vm6593_vm7, %v5177_v17, %v2800_v18  ;;  %v2802_v20 = vrot.slane %v2800_v18, 4  ;;  %v6750_v14 = vld [vmem:[%s6341_s25 + $0xb4] sm:$0xf] }
  0x76   : > { %v539_v44 = vrot.slane %v537_v25, 4  ;;  %v530_v34 = vrot.slane %v529_v31, 4  ;;  %v542_v45 = vrot.slane %v540_v38, 5  ;;  %v548_v47 = vrot.slane %v546_v1, 5 }
  0x77   : > { %v552_v26 = vrot.slane %v550_v28, 4  ;;  %v525_v48 = vsel %vm6367_vm4, %v520_v60, %v524_v2  ;;  %v2804_v49 = vsel %vm6593_vm7, %v2802_v20, %v2803_v21  ;;  %v556_v50 = vshll.u32 %v218_v10, 16  ;;  %v5163_v2 = vld [vmem:[%s6341_s25 + $0x54] sm:$0xe] }
  0x78   : > { %v5178_v51 = vrot.slane %v5162_v11, 9  ;;  %v535_v15 = vsel %vm6367_vm4, %v530_v34, %v534_v41  ;;  %v5194_v62 = vcombine.low %v2801_v42, %v2804_v49  ;;  %v543_v40 = vor.u32 %v542_v45, %v539_v44  ;;  %v6759_v42 = vld [vmem:[%s6341_s25 + $0xb8] sm:$0xf]  ;;  %v220_v49 = vld [vmem:[%s6341_s25 + $0xbc] sm:$0x1] }
  0x79   : > { %v553_v55 = vor.u32 %v552_v26, %v548_v47  ;;  %v4910_v57 = vcombine.low %v525_v48, %v535_v15  ;;  %v558_v63 = vrot.slane %v556_v50, 5  ;;  %v2807_v58 = vrot.slane %v6494_v8, 5 }
  0x7a   : > { %v2810_v54 = vrot.slane %v6502_v23, 5  ;;  %5770 = vmatprep.mubr.msk.bf16.mxu0 %vm658_vm3, %v5194_v62  ;;  %v544_v6 = vrot.slane %v543_v40, 4  ;;  %v561_v41 = vshrl.u32 %v6730_v33, 16  ;;  %v564_v17 = vshll.u32 %v6730_v33, 16 }
  0x7b   : > { %v554_v7 = vrot.slane %v553_v55, 4  ;;  %5616 = vmatprep.mubr.msk.bf16.mxu1 %vm658_vm3, %v4910_v57  ;;  %v2808_v10 = vsel %vm6593_vm7, %v5178_v51, %v2807_v58  ;;  %v2809_v11 = vrot.slane %v2807_v58, 4  ;;  %v570_v8 = vshll.u32 %v6735_v56, 16  ;;  %v5164_v55 = vld [vmem:[%s6341_s25 + $0x60] sm:$0xe] }
  0x7c   : > { %v574_v23 = vshrl.u32 %v6735_v56, 16  ;;  %v549_v18 = vsel %vm6367_vm4, %v544_v6, %v548_v47  ;;  %v563_v25 = vrot.slane %v561_v41, 4  ;;  %v566_v31 = vrot.slane %v564_v17, 5  ;;  %v5165_v6 = vld [vmem:[%s6341_s25 + $0x6c] sm:$0xe] }
  0x7d   : > { %v559_v21 = vsel %vm6367_vm4, %v554_v7, %v558_v63  ;;  %v2811_v1 = vsel %vm6593_vm7, %v2809_v11, %v2810_v54  ;;  %v572_v28 = vrot.slane %v570_v8, 5  ;;  %v580_v34 = vshll.u32 %v219_v61, 16  ;;  %v5101_v11 = vld [vmem:[%s6341_s25 + $0x70] sm:$0xf]  ;;  %v5102_v8 = vld [vmem:[%s6341_s25 + $0x74] sm:$0x1] }
  0x7e   : > { %v4911_v38 = vcombine.low %v549_v18, %v559_v21  ;;  %v576_v60 = vrot.slane %v574_v23, 4  ;;  %v5195_v20 = vcombine.low %v2808_v10, %v2811_v1  ;;  %v567_v44 = vor.u32 %v566_v31, %v563_v25 }
  0x7f   : > { %v5179_v45 = vrot.slane %v5163_v2, 9  ;;  %v2814_v26 = vrot.slane %v6525_v4, 5  ;;  %v2817_v48 = vrot.slane %v6531_v12, 5  ;;  %v585_v50 = vshrl.u32 %v6750_v14, 16 }
  0x80   : > { %5617 = vmatmul.mubr.msk.bf16.gmra.mrb[24].mxu1 %vm658_vm3, %v4911_v38  ;;  %v577_v47 = vor.u32 %v576_v60, %v572_v28  ;;  %5771 = vmatmul.mubr.msk.bf16.gmra.mrb[8].mxu0 %vm658_vm3, %v5195_v20  ;;  %v568_v51 = vrot.slane %v567_v44, 4  ;;  %v582_v15 = vrot.slane %v580_v34, 5  ;;  %v588_v62 = vshll.u32 %v6750_v14, 16 }
  0x81   : > { %v594_v40 = vshll.u32 %v6759_v42, 16  ;;  %v2815_v4 = vsel %vm6593_vm7, %v5179_v45, %v2814_v26  ;;  %v2816_v12 = vrot.slane %v2814_v26, 4  ;;  %v587_v63 = vrot.slane %v585_v50, 4 }
  0x82   : > { %v578_v57 = vrot.slane %v577_v47, 4  ;;  %v573_v58 = vsel %vm6367_vm4, %v568_v51, %v572_v28  ;;  %v590_v54 = vrot.slane %v588_v62, 5  ;;  %v598_v2 = vshrl.u32 %v6759_v42, 16  ;;  %v5166_v47 = vld [vmem:[%s6341_s25 + $0x78] sm:$0xe] }
  0x83   : > { %v596_v61 = vrot.slane %v594_v40, 5  ;;  %v2818_v41 = vsel %vm6593_vm7, %v2816_v12, %v2817_v48  ;;  %v604_v17 = vshll.u32 %v220_v49, 16  ;;  %v5180_v10 = vrot.slane %v5164_v55, 9  ;;  %v6221_v51 = vld [vmem:[%s6341_s25] sm:$0xf] }
  0x84   : > { %v583_v7 = vsel %vm6367_vm4, %v578_v57, %v582_v15  ;;  %v5196_v18 = vcombine.low %v2815_v4, %v2818_v41  ;;  %v591_v21 = vor.u32 %v590_v54, %v587_v63  ;;  %v600_v25 = vrot.slane %v598_v2, 4  ;;  %v6797_v15 = vld [vmem:[%s6341_s25 + $0x4] sm:$0xf]  ;;  %v6801_v40 = vld [vmem:[%s6341_s25 + $0x7c] sm:$0xf] }
  0x85   : > { %v4912_v23 = vcombine.low %v573_v58, %v583_v7  ;;  %v606_v31 = vrot.slane %v604_v17, 5  ;;  %v2821_v38 = vrot.slane %v6555_v59, 5  ;;  %v2824_v1 = vrot.slane %v6562_v9, 5  ;;  %v6804_v55 = vld [vmem:[%s6341_s25 + $0x80] sm:$0x1] }
  0x86   : > { %v5181_v28 = vrot.slane %v5165_v6, 9  ;;  %5774 = vmatprep.mubr.msk.bf16.mxu0 %vm658_vm3, %v5196_v18  ;;  %v592_v60 = vrot.slane %v591_v21, 4  ;;  %v601_v20 = vor.u32 %v600_v25, %v596_v61  ;;  %v2828_v44 = vrot.slane %v5101_v11, 5  ;;  %v5107_v57 = vld [vmem:[%s6341_s25 + $0x88] sm:$0xf] }
  0x87   : > { %5620 = vmatprep.mubr.msk.bf16.mxu1 %vm658_vm3, %v4912_v23  ;;  %v2831_v34 = vrot.slane %v5102_v8, 5  ;;  %v2822_v45 = vsel %vm6593_vm7, %v5180_v10, %v2821_v38  ;;  %v2823_v59 = vrot.slane %v2821_v38, 4  ;;  %v4930_v62 = vcombine.low %v6221_v51, %v6797_v15  ;;  %v5108_v54 = vld [vmem:[%s6341_s25 + $0x8c] sm:$0x1]  ;;  %v5110_v17 = vld [vmem:[%s6341_s25 + $0x94] sm:$0xf] }
  0x88   : > { %v597_v9 = vsel %vm6367_vm4, %v592_v60, %v596_v61  ;;  %v602_v26 = vrot.slane %v601_v20, 4  ;;  %v2829_v48 = vsel %vm6593_vm7, %v5181_v28, %v2828_v44  ;;  %v2830_v49 = vrot.slane %v2828_v44, 4  ;;  %v5167_v61 = vld [vmem:[%s6341_s25 + $0x84] sm:$0xe]  ;;  %v5168_v23 = vld [vmem:[%s6341_s25 + $0x90] sm:$0xe] }
  0x89   : > { %v2825_v50 = vsel %vm6593_vm7, %v2823_v59, %v2824_v1  ;;  %v5182_v58 = vrot.slane %v5166_v47, 9  ;;  %v2835_v7 = vrot.slane %v6801_v40, 5  ;;  %v2838_v41 = vrot.slane %v6804_v55, 5  ;;  %v5111_v25 = vld [vmem:[%s6341_s25 + $0x98] sm:$0x1] }
  0x8a   : > { %v607_v4 = vsel %vm6367_vm4, %v602_v26, %v606_v31  ;;  %v5197_v12 = vcombine.low %v2822_v45, %v2825_v50  ;;  %v2832_v63 = vsel %vm6593_vm7, %v2830_v49, %v2831_v34  ;;  %v5183_v10 = vrot.slane %v5167_v61, 9  ;;  %v5113_v31 = vld [vmem:[%s6341_s25 + $0xa0] sm:$0xf]  ;;  %v5114_v60 = vld [vmem:[%s6341_s25 + $0xa4] sm:$0x1] }
  0x8b   : > { %v4913_v2 = vcombine.low %v597_v9, %v607_v4  ;;  %v5198_v6 = vcombine.low %v2829_v48, %v2832_v63  ;;  %v2842_v11 = vrot.slane %v5107_v57, 5  ;;  %v2845_v8 = vrot.slane %v5108_v54, 5  ;;  %v5169_v20 = vld [vmem:[%s6341_s25 + $0x9c] sm:$0xe]  ;;  %v6223_v44 = vld [vmem:[%s6341_s25 + $0xc] sm:$0xf] }
  0x8c   : > { %5775 = vmatmul.mubr.msk.bf16.gmra.mrb[12].mxu0 %vm658_vm3, %v5197_v12  ;;  %v2836_v18 = vsel %vm6593_vm7, %v5182_v58, %v2835_v7  ;;  %v2837_v21 = vrot.slane %v2835_v7, 4  ;;  %v2849_v28 = vrot.slane %v5110_v17, 5  ;;  %v6831_v34 = vld [vmem:[%s6341_s25 + $0x10] sm:$0xf]  ;;  %v6225_v47 = vld [vmem:[%s6341_s25 + $0x18] sm:$0xf] }
  0x8d   : > { %5621 = vmatmul.mubr.msk.bf16.gmra.mrb[28].mxu1 %vm658_vm3, %v4913_v2  ;;  %5778 = vmatprep.mubr.msk.bf16.mxu0 %vm658_vm3, %v5198_v6  ;;  %v2843_v38 = vsel %vm6593_vm7, %v5183_v10, %v2842_v11  ;;  %v2844_v1 = vrot.slane %v2842_v11, 4  ;;  %v4931_v45 = vcombine.low %v6223_v44, %v6831_v34  ;;  %v6838_v9 = vld [vmem:[%s6341_s25 + $0x1c] sm:$0xf]  ;;  %v5184_v48 = vrot.slane %v5168_v23, 9  ;;  %v5116_v57 = vld [vmem:[%s6341_s25 + $0xac] sm:$0xf] }
  0x8e   : > { %5626 = vmatprep.mubr.msk.bf16.mxu1 %vm658_vm3, %v4930_v62  ;;  %v2839_v59 = vsel %vm6593_vm7, %v2837_v21, %v2838_v41  ;;  %v4932_v26 = vcombine.low %v6225_v47, %v6838_v9  ;;  %v2851_v51 = vrot.slane %v2849_v28, 4  ;;  %v2852_v62 = vrot.slane %v5111_v25, 5  ;;  %v6227_v54 = vld [vmem:[%s8108_s1 + $0x8] sm:$0xf]  ;;  %v5119_v2 = vld [vmem:[%s6341_s25 + $0xb8] sm:$0xf] }
  0x8f   : > { %v5199_v49 = vcombine.low %v2836_v18, %v2839_v59  ;;  %v2846_v50 = vsel %vm6593_vm7, %v2844_v1, %v2845_v8  ;;  %v5185_v12 = vrot.slane %v5169_v20, 9  ;;  %v2856_v63 = vrot.slane %v5113_v31, 5  ;;  %v6853_v7 = vld [vmem:[%s8108_s1 + $0xc] sm:$0xf]  ;;  %v5117_v10 = vld [vmem:[%s6341_s25 + $0xb0] sm:$0x1] }
  0x90   : > { %v5200_v4 = vcombine.low %v2843_v38, %v2846_v50  ;;  %v2859_v58 = vrot.slane %v5114_v60, 5  ;;  %v1426_v61 = vsel %vm707_vm0, %v6227_v54, 0  ;;  %v2850_v41 = vsel %vm6593_vm7, %v5184_v48, %v2849_v28  ;;  %v5170_v11 = vld [vmem:[%s6341_s25 + $0xa8] sm:$0xe]  ;;  %v5120_v25 = vld [vmem:[%s6341_s25 + $0xbc] sm:$0x1] }
  0x91   : > { %v2858_v6 = vrot.slane %v2856_v63, 4  ;;  %v2853_v17 = vsel %vm6593_vm7, %v2851_v51, %v2852_v62  ;;  %v2863_v8 = vrot.slane %v5116_v57, 5  ;;  %v2857_v23 = vsel %vm6593_vm7, %v5185_v12, %v2856_v63  ;;  %v5171_v31 = vld [vmem:[%s6341_s25 + $0xb4] sm:$0xe]  ;;  %v6228_v38 = vld [vmem:[%s6341_s25 + $0x24] sm:$0xf] }
  0x92   : > { %v2870_v21 = vrot.slane %v5119_v2, 5  ;;  %v6874_v1 = vld [vmem:[%s6341_s25 + $0x28] sm:$0xf]  ;;  %v5201_v60 = vcombine.low %v2850_v41, %v2853_v17  ;;  %v5186_v44 = vrot.slane %v5170_v11, 9  ;;  %v2866_v59 = vrot.slane %v5117_v10, 5 }
  0x93   : > { %v2860_v18 = vsel %vm6593_vm7, %v2858_v6, %v2859_v58  ;;  %v4933_v28 = vcombine.low %v6228_v38, %v6874_v1  ;;  %v6230_v47 = vld [vmem:[%s6341_s25 + $0x30] sm:$0xf]  ;;  %v2873_v51 = vrot.slane %v5120_v25, 5  ;;  %v5122_v62 = vld [vmem:[%s6341_s25 + $0xc4] sm:$0xf]  ;;  %v2258_v25 = vshrl.u32 %v6801_v40, 16 }
  0x94   : > { %5779 = vmatmul.mubr.msk.bf16.gmra.mrb[16].mxu0 %vm658_vm3, %v5199_v49  ;;  %v5202_v20 = vcombine.low %v2857_v23, %v2860_v18  ;;  %v5187_v49 = vrot.slane %v5171_v31, 9  ;;  %v2872_v50 = vrot.slane %v2870_v21, 4  ;;  %v2864_v57 = vsel %vm6593_vm7, %v5186_v44, %v2863_v8  ;;  %v5172_v12 = vld [vmem:[%s6341_s25 + $0xc0] sm:$0xe]  ;;  %v6232_v41 = vld [vmem:[%s6341_s25 + $0x3c] sm:$0xf] }
  0x95   : > { %5627 = vmatmul.mubr.msk.bf16.vlgmr.msra.gmra.mrb[0].mxu1 %vm658_vm3, %v4931_v45  ;;  %5782 = vmatprep.mubr.msk.bf16.mxu0 %vm658_vm3, %v5200_v4  ;;  %v2865_v45 = vrot.slane %v2863_v8, 4  ;;  %v2877_v63 = vrot.slane %v5122_v62, 5  ;;  %v5188_v6 = vrot.slane %v5172_v12, 9  ;;  %v6899_v17 = vld [vmem:[%s6341_s25 + $0x40] sm:$0xf]  ;;  %v4936_v18 = vcombine.low %v6506_v27, %v6509_v36  ;;  %v6184_v62 = vld [vmem:[%s6341_s25 + $0x24] sm:$0xff]  }
  0x96   : > { %5659 = vmatpush3.bf16.msra.mxu1 %v1426_v61  ;;  %5630 = vmatprep.mubr.msk.bf16.mxu1 %vm658_vm3, %v4932_v26  ;;  %v6879_v26 = vld [vmem:[%s6341_s25 + $0x34] sm:$0xf]  ;;  %v2871_v58 = vsel %vm6593_vm7, %v5187_v49, %v2870_v21  ;;  %v2874_v54 = vsel %vm6593_vm7, %v2872_v50, %v2873_v51  ;;  %v5123_v61 = vld [vmem:[%s6341_s25 + $0xc8] sm:$0x1]  ;;  %v4935_v10 = vcombine.low %v6232_v41, %v6899_v17  ;;  %v2254_v21 = vshll.u32 %v6801_v40, 16 }
  0x97   : > { %6157 = vmatprep.subr.msk.bf16.mxu1 %vm707_vm0, %v6853_v7  ;;  %v4934_v48 = vcombine.low %v6230_v47, %v6879_v26  ;;  %v2867_v4 = vsel %vm6593_vm7, %v2865_v45, %v2866_v59  ;;  %v5204_v11 = vcombine.low %v2871_v58, %v2874_v54  ;;  %v2879_v8 = vrot.slane %v2877_v63, 4  ;;  %v1164_v45 = vld [vmem:[%s6341_s25] sm:$0xe]  ;;  %v1165_v59 = vld [vmem:[%s6341_s25 + $0xc] sm:$0xe] }
  0x98   : > { %v5203_v2 = vcombine.low %v2864_v57, %v2867_v4  ;;  %v2880_v23 = vrot.slane %v5123_v61, 5  ;;  %v2878_v31 = vsel %vm6593_vm7, %v5188_v6, %v2877_v63  ;;  %v6914_v27 = vrot.slane %v2254_v21, 5  ;;  %v1168_v41 = vld [vmem:[%s6341_s25 + $0x30] sm:$0xe] }
  0x99   : > { %v2260_v36 = vrot.slane %v2258_v25, 4  ;;  %v4938_v44 = vcombine.low %v6566_v19, %v6572_v35  ;;  %v2264_v47 = vshll.u32 %v6804_v55, 16  ;;  %v4962_v19 = vrot.slane %v1164_v45, 9 }
  0x9a   : > { %v2881_v38 = vsel %vm6593_vm7, %v2879_v8, %v2880_v23  ;;  %8129 = vst [vmem:[#allocation3_spill] sm:$0xff] %v6914_v27  ;;  %v4963_v35 = vrot.slane %v1165_v59, 9  ;;  %v1231_v4 = vrot.slane %v6838_v9, 5  ;;  %v1238_v12 = vrot.slane %v6874_v1, 5  ;;  %v1169_v8 = vld [vmem:[%s6341_s25 + $0x3c] sm:$0xe] }
  0x9b   : > { %v5205_v40 = vcombine.low %v2878_v31, %v2881_v38  ;;  %v2261_v49 = vor.u32 %v2260_v36, %v6914_v27  ;;  %v6934_v51 = vrot.slane %v2264_v47, 5  ;;  %v4939_v58 = vcombine.low %v6587_v0, %v6600_v29  ;;  %v1170_v31 = vld [vmem:[%s6341_s25 + $0x48] sm:$0xe]  ;;  %v6238_v59 = vld [vmem:[%s6341_s25 + $0x38] sm:$0x1] }
  0x9c   : > { %5783 = vmatmul.mubr.msk.bf16.gmra.mrb[20].mxu0 %vm658_vm3, %v5201_v60  ;;  %v4937_v60 = vcombine.low %v6535_v24, %v6541_v37  ;;  %v6235_v24 = vld [vmem:[%s6341_s25 + $0x14] sm:$0x1]  ;;  %v4066_v54 = vsel %vm707_vm0, %v6658_v22, 0  ;;  %v4940_v61 = vcombine.low %v6619_v53, %v6626_v16  ;;  %v4941_v6 = vcombine.low %v6645_v39, %v6653_v43  ;;  %v6236_v16 = vld [vmem:[%s6341_s25 + $0x20] sm:$0x1] }
  0x9d   : > { %5631 = vmatmul.mubr.msk.bf16.gmra.mrb[4].mxu1 %vm658_vm3, %v4933_v28  ;;  %5786 = vmatprep.mubr.msk.bf16.mxu0 %vm658_vm3, %v5202_v20  ;;  %v1224_v28 = vrot.slane %v6831_v34, 5  ;;  %v6182_v20 = vld [vmem:[%s6341_s25 + $0x18] sm:$0xff]   ;;  %v6234_v34 = vld [vmem:[%s6341_s25 + $0x8] sm:$0x1]  ;;  %v1227_v37 = vrot.slane %v6235_v24, 5  ;;  %8130 = vst [vmem:[#allocation4_spill] sm:$0xff] %v6934_v51  ;;  %v4942_v9 = vcombine.low %v6677_v5, %v6689_v30 }
  0x9e   : > { %5634 = vmatprep.mubr.msk.bf16.mxu1 %vm658_vm3, %v4934_v48  ;;  %v1217_v48 = vrot.slane %v6797_v15, 5  ;;  %v1220_v50 = vrot.slane %v6234_v34, 5  ;;  %v1166_v15 = vld [vmem:[%s6341_s25 + $0x18] sm:$0xe]  ;;  %v6939_v63 = vrot.slane %v2261_v49, 4  ;;  %v1234_v22 = vrot.slane %v6236_v16, 5 }
  0x9f   : > { %v1226_v55 = vrot.slane %v1224_v28, 4  ;;  %v4964_v1 = vrot.slane %v1166_v15, 9  ;;  %v6961_v29 = vsel %vm6593_vm7, %v4963_v35, %v1224_v28  ;;  %v1240_v25 = vrot.slane %v1238_v12, 4  ;;  %v5287_v24 = vld [vmem:[%s6341_s25 + $0x18] sm:$0xf] }
  0xa0   : > { %v1219_v57 = vrot.slane %v1217_v48, 4  ;;  %8131 = vst [vmem:[#allocation5_spill] sm:$0xff] %v6939_v63  ;;  %v6957_v0 = vsel %vm6593_vm7, %v4962_v19, %v1217_v48  ;;  %v1248_v47 = vrot.slane %v6238_v59, 5  ;;  %v6998_v49 = vsel %vm707_vm0, %v6853_v7, 0  ;;  %v5288_v7 = vld [vmem:[%s6341_s25 + $0x1c] sm:$0xf] }
  0xa1   : > { %v6965_v53 = vsel %vm6593_vm7, %v1226_v55, %v1227_v37  ;;  %v7002_v34 = vsel %vm6593_vm7, %v4964_v1, %v1231_v4  ;;  %v6188_v37 = vld [vmem:[%s6341_s25 + $0x3c] sm:$0xff]   ;;  %v4967_v35 = vrot.slane %v1169_v8, 9  ;;  %v6239_v55 = vld [vmem:[%s6341_s25 + $0x44] sm:$0x1]  ;;  %v3587_v8 = vshll.u32 %v5287_v24, 16 }
  0xa2   : > { %v6976_v23 = vsel %vm6593_vm7, %v1219_v57, %v1220_v50  ;;  %v1171_v50 = vld [vmem:[%s6341_s25 + $0x54] sm:$0xe]  ;;  %v1255_v15 = vrot.slane %v6239_v55, 5  ;;  %v5291_v39 = vld [vmem:[%s6341_s25 + $0x28] sm:$0xf] }
  0xa3   : > { %v6246_v5 = vld [vmem:[%s6341_s25 + $0x70] sm:$0xf] }
  0xa4   : > { %5787 = vmatmul.mubr.msk.bf16.gmra.mrb[24].mxu0 %vm658_vm3, %v5203_v2  ;;  %v1167_v2 = vld [vmem:[%s6341_s25 + $0x24] sm:$0xe]  ;;  %v1280_v30 = vrot.slane %v6246_v5, 5 }
  0xa5   : > { %5635 = vmatmul.mubr.msk.bf16.gmra.mrb[8].mxu1 %vm658_vm3, %v4935_v10  ;;  %5790 = vmatprep.mubr.msk.bf16.mxu0 %vm658_vm3, %v5204_v11  ;;  %v1245_v10 = vrot.slane %v6879_v26, 5  ;;  %v6186_v11 = vld [vmem:[%s6341_s25 + $0x30] sm:$0xff]   ;;  %v6972_v26 = vld [vmem:[%s8108_s1 + $0x20] sm:$0xf]  ;;  %v4965_v21 = vrot.slane %v1167_v2, 9 }
  0xa6   : > { %5638 = vmatprep.mubr.msk.bf16.mxu1 %vm658_vm3, %v4936_v18  ;;  %v1233_v18 = vrot.slane %v1231_v4, 4  ;;  %v1282_v48 = vrot.slane %v1280_v30, 4 }
  0xa7   : > { %v1247_v45 = vrot.slane %v1245_v10, 4  ;;  %v7009_v19 = vsel %vm6593_vm7, %v4965_v21, %v1238_v12  ;;  %v3597_v21 = vshrl.u32 %v5288_v7, 16 }
  0xa8   : > { %v7018_v4 = vsel %vm6593_vm7, %v1233_v18, %v1234_v22  ;;  %v3584_v22 = vshrl.u32 %v5287_v24, 16  ;;  %v3593_v18 = vshll.u32 %v5288_v7, 16  ;;  %v5290_v24 = vld [vmem:[%s6341_s25 + $0x24] sm:$0xf] }
  0xa9   : > { %v7031_v1 = vsel %vm6593_vm7, %v1247_v45, %v1248_v47 }
  0xaa   : > { %v3586_v43 = vrot.slane %v3584_v22, 4  ;;  %v7073_v7 = vrot.slane %v3593_v18, 5  ;;  %v3611_v22 = vshll.u32 %v5290_v24, 16  ;;  %v3621_v18 = vshrl.u32 %v5291_v39, 16 }
  0xac   : > { %5791 = vmatmul.mubr.msk.bf16.gmra.mrb[28].mxu0 %vm658_vm3, %v5205_v40  ;;  %v6237_v40 = vld [vmem:[%s6341_s25 + $0x2c] sm:$0x1]  ;;  %v3613_v27 = vrot.slane %v3611_v22, 5 }
  0xad   : > { %5639 = vmatmul.mubr.msk.bf16.gmra.mrb[12].mxu1 %vm658_vm3, %v4937_v60  ;;  %5796 = vmatprep.mubr.msk.bf16.mxu0 %vm658_vm3, %v6182_v20  ;;  %v1241_v28 = vrot.slane %v6237_v40, 5  ;;  %v1252_v60 = vrot.slane %v6899_v17, 5  ;;  %v6242_v40 = vld [vmem:[%s6341_s25 + $0x50] sm:$0x1]  ;;  %v6247_v17 = vld [vmem:[%s6341_s25 + $0x74] sm:$0x1] }
  0xae   : > { %5642 = vmatprep.mubr.msk.bf16.mxu1 %vm658_vm3, %v4938_v44  ;;  %v4966_v44 = vrot.slane %v1168_v41, 9  ;;  %v4969_v41 = vrot.slane %v1171_v50, 9  ;;  %v1172_v50 = vld [vmem:[%s6341_s25 + $0x60] sm:$0xe]  ;;  %v5292_v20 = vld [vmem:[%s6341_s25 + $0x2c] sm:$0x1] }
  0xaf   : > { %v1254_v12 = vrot.slane %v1252_v60, 4  ;;  %v7044_v45 = vsel %vm6593_vm7, %v4967_v35, %v1252_v60  ;;  %v6243_v35 = vld [vmem:[%s6341_s25 + $0x5c] sm:$0x1] }
  0xb0   : > { %v7027_v2 = vsel %vm6593_vm7, %v4966_v44, %v1245_v10  ;;  %v1269_v55 = vrot.slane %v6243_v35, 5  ;;  %v1173_v35 = vld [vmem:[%s6341_s25 + $0x6c] sm:$0xe] }
  0xb1   : > { %v7048_v59 = vsel %vm6593_vm7, %v1254_v12, %v1255_v15  ;;  %v6244_v15 = vld [vmem:[%s6341_s25 + $0x64] sm:$0xf]  ;;  %v3599_v12 = vrot.slane %v3597_v21, 4  ;;  %v4971_v5 = vrot.slane %v1173_v35, 9 }
  0xb2   : > { %v6194_v21 = vld [vmem:[%s6341_s25 + $0x60] sm:$0xff]  }
  0xb4   : > { %5797 = vmatmul.mubr.msk.bf16.vlgmr.msra.gmra.mrb[0].mxu0 %vm658_vm3, %v6184_v62  ;;  %v6240_v62 = vld [vmem:[%s6341_s25 + $0x4c] sm:$0xf] }
  0xb5   : > { %5643 = vmatmul.mubr.msk.bf16.gmra.mrb[16].mxu1 %vm658_vm3, %v4939_v58  ;;  %5829 = vmatpush3.bf16.msra.mxu0 %v4066_v54  ;;  %v1259_v57 = vrot.slane %v6240_v62, 5  ;;  %v7022_v58 = vsel %vm6593_vm7, %v1240_v25, %v1241_v28  ;;  %v4968_v54 = vrot.slane %v1170_v31, 9  ;;  %v1262_v28 = vrot.slane %v6242_v40, 5 }
  0xb6   : > { %5646 = vmatprep.mubr.msk.bf16.mxu1 %vm658_vm3, %v4940_v61  ;;  %5800 = vmatprep.mubr.msk.bf16.mxu0 %vm658_vm3, %v6186_v11  ;;  %v6190_v61 = vld [vmem:[%s6341_s25 + $0x48] sm:$0xff]   ;;  %v6241_v11 = vld [vmem:[%s6341_s25 + $0x58] sm:$0xf]  ;;  %v1273_v62 = vrot.slane %v6244_v15, 5  ;;  %v5294_v15 = vld [vmem:[%s6341_s25 + $0x34] sm:$0xf] }
  0xb7   : > { %6163 = vmatprep.subr.msk.bf16.mxu0 %vm707_vm0, %v6972_v26  ;;  %v1266_v16 = vrot.slane %v6241_v11, 5  ;;  %v1261_v31 = vrot.slane %v1259_v57, 4  ;;  %v7052_v47 = vsel %vm6593_vm7, %v4968_v54, %v1259_v57  ;;  %v5289_v57 = vld [vmem:[%s6341_s25 + $0x20] sm:$0x1]  ;;  %v5293_v54 = vld [vmem:[%s6341_s25 + $0x30] sm:$0xf] }
  0xb8   : > { %v4970_v11 = vrot.slane %v1172_v50, 9  ;;  %v3635_v50 = vshll.u32 %v5293_v54, 16  ;;  %v3603_v25 = vshll.u32 %v5289_v57, 16  ;;  %v3641_v36 = vshll.u32 %v5294_v15, 16 }
  0xb9   : > { %v7063_v60 = vsel %vm6593_vm7, %v4969_v41, %v1266_v16  ;;  %v7079_v41 = vsel %vm6593_vm7, %v1261_v31, %v1262_v28  ;;  %v1275_v31 = vrot.slane %v1273_v62, 4  ;;  %v3632_v28 = vshrl.u32 %v5293_v54, 16 }
  0xba   : > { %v7121_v35 = vrot.slane %v3641_v36, 5 }
  0xbc   : > { %5801 = vmatmul.mubr.msk.bf16.gmra.mrb[4].mxu0 %vm658_vm3, %v6188_v37  ;;  %v1268_v37 = vrot.slane %v1266_v16, 4  ;;  %v6245_v16 = vld [vmem:[%s6341_s25 + $0x68] sm:$0x1] }
  0xbd   : > { %5647 = vmatmul.mubr.msk.bf16.gmra.mrb[20].mxu1 %vm658_vm3, %v4941_v6  ;;  %5804 = vmatprep.mubr.msk.bf16.mxu0 %vm658_vm3, %v6190_v61  ;;  %v3589_v6 = vrot.slane %v3587_v8, 5  ;;  %v6192_v61 = vld [vmem:[%s6341_s25 + $0x54] sm:$0xff]   ;;  %v1276_v40 = vrot.slane %v6245_v16, 5  ;;  %v3617_v8 = vshll.u32 %v5291_v39, 16  ;;  %v3600_v16 = vor.u32 %v3599_v12, %v7073_v7 }
  0xbe   : > { %5650 = vmatprep.mubr.msk.bf16.mxu1 %vm658_vm3, %v4942_v9  ;;  %v3608_v9 = vshrl.u32 %v5290_v24, 16  ;;  %v7088_v44 = vsel %vm6593_vm7, %v1268_v37, %v1269_v55  ;;  %v1283_v24 = vrot.slane %v6247_v17, 5  ;;  %v3645_v39 = vshrl.u32 %v5294_v15, 16 }
  0xbf   : > { %v3590_v10 = vor.u32 %v3589_v6, %v3586_v43  ;;  %v7094_v37 = vrot.slane %v3617_v8, 5  ;;  %v3623_v55 = vrot.slane %v3621_v18, 4  ;;  %v8132_v43 = vcombine.low %v6698_v52, %v6709_v46  ;;  %v6248_v8 = vld [vmem:[%s6341_s25 + $0x7c] sm:$0xf]  ;;  %v7130_v18 = vld [vmem:[%s6341_s25 + $0x38] sm:$0x1] }
  0xc0   : > { %v3610_v38 = vrot.slane %v3608_v9, 4  ;;  %v7103_v17 = vsel %vm6593_vm7, %v4970_v11, %v1273_v62  ;;  %v7107_v57 = vsel %vm6593_vm7, %v1275_v31, %v1276_v40  ;;  %v3634_v6 = vrot.slane %v3632_v28, 4  ;;  %8134 = vst [vmem:[#allocation6_spill] sm:$0xff] %v7130_v18 }
  0xc1   : > { %v3637_v12 = vrot.slane %v3635_v50, 5  ;;  %v8133_v52 = vcombine.low %v6730_v33, %v6735_v56  ;;  %v3591_v46 = vrot.slane %v3590_v10, 4  ;;  %v3601_v54 = vrot.slane %v3600_v16, 4  ;;  %v6196_v33 = vld [vmem:[%s6341_s25 + $0x6c] sm:$0xff]   ;;  %v1175_v16 = vld [vmem:[%s6341_s25 + $0x84] sm:$0xe] }
  0xc2   : > { %v3627_v62 = vshll.u32 %v5292_v20, 16  ;;  %v7115_v11 = vsel %vm6593_vm7, %v4971_v5, %v1280_v30  ;;  %v7119_v40 = vsel %vm6593_vm7, %v1282_v48, %v1283_v24  ;;  %v3647_v9 = vrot.slane %v3645_v39, 4  ;;  %v6197_v48 = vld [vmem:[%s6341_s25 + $0x78] sm:$0xff]  }
  0xc3   : > { %v3614_v10 = vor.u32 %v3613_v27, %v3610_v38  ;;  %v3624_v20 = vor.u32 %v3623_v55, %v7094_v37  ;;  %v1287_v30 = vrot.slane %v6248_v8, 5  ;;  %v3638_v38 = vor.u32 %v3637_v12, %v3634_v6  ;;  %v5296_v5 = vld [vmem:[%s6341_s25 + $0x3c] sm:$0xf] }
  0xc4   : > { %5805 = vmatmul.mubr.msk.bf16.gmra.mrb[8].mxu0 %vm658_vm3, %v6192_v61  ;;  %v3605_v61 = vrot.slane %v3603_v25, 5  ;;  %v1174_v25 = vld [vmem:[%s6341_s25 + $0x78] sm:$0xe]  ;;  %v7146_v50 = vrot.slane %v3627_v62, 5  ;;  %v3648_v39 = vor.u32 %v3647_v9, %v7121_v35  ;;  %v3651_v55 = vshll.u32 %v7130_v18, 16 }
  0xc5   : > { %5651 = vmatmul.mubr.msk.bf16.gmra.mrb[24].mxu1 %vm658_vm3, %v8132_v43  ;;  %5808 = vmatprep.mubr.msk.bf16.mxu0 %vm658_vm3, %v6194_v21  ;;  %v3596_v21 = vsel %vm6367_vm4, %v3591_v46, %v7073_v7  ;;  %v4972_v24 = vrot.slane %v1174_v25, 9  ;;  %v6249_v43 = vld [vmem:[%s6341_s25 + $0x88] sm:$0xf]  ;;  %v7154_v7 = vld [vmem:[%s6341_s25 + $0x40] sm:$0xf]  ;;  %v3615_v12 = vrot.slane %v3614_v10, 4  ;;  %v8136_v62 = vcombine.low %v6750_v14, %v6759_v42 }
  0xc6   : > { %5654 = vmatprep.mubr.msk.bf16.mxu1 %vm658_vm3, %v8133_v52  ;;  %v3606_v31 = vsel %vm6367_vm4, %v3601_v54, %v3605_v61  ;;  %v1294_v6 = vrot.slane %v6249_v43, 5  ;;  %8135 = vst [vmem:[#allocation7_spill] sm:$0xff] %v7154_v7  ;;  %v3625_v52 = vrot.slane %v3624_v20, 4  ;;  %v1289_v46 = vrot.slane %v1287_v30, 4  ;;  %v6250_v54 = vld [vmem:[%s6341_s25 + $0x80] sm:$0x1] }
  0xc7   : > { %v1290_v61 = vrot.slane %v6250_v54, 5  ;;  %v3639_v9 = vrot.slane %v3638_v38, 4  ;;  %v4973_v25 = vrot.slane %v1175_v16, 9  ;;  %v3656_v8 = vshrl.u32 %v5296_v5, 16  ;;  %v6198_v10 = vld [vmem:[%s6341_s25 + $0x84] sm:$0xff]  }
  0xc8   : > { %v3659_v43 = vshll.u32 %v5296_v5, 16  ;;  %v7168_v20 = vcombine.low %v3596_v21, %v3606_v31  ;;  %v7172_v14 = vsel %vm707_vm0, %v6972_v26, 0  ;;  %v3669_v38 = vshrl.u32 %v7154_v7, 16  ;;  %v6199_v21 = vld [vmem:[%s6341_s25 + $0x90] sm:$0xff]   ;;  %v6255_v18 = vld [vmem:[%s6341_s25 + $0xa0] sm:$0xf] }
  0xc9   : > { %v3649_v16 = vrot.slane %v3648_v39, 4  ;;  %v3653_v5 = vrot.slane %v3651_v55, 5  ;;  %v1296_v54 = vrot.slane %v1294_v6, 4  ;;  %v3620_v31 = vsel %vm6367_vm4, %v3615_v12, %v7094_v37 }
  0xca   : > { %v3630_v26 = vsel %vm6367_vm4, %v3625_v52, %v7146_v50  ;;  %v7187_v39 = vsel %vm6593_vm7, %v4972_v24, %v1287_v30  ;;  %v7191_v55 = vsel %vm6593_vm7, %v1289_v46, %v1290_v61  ;;  %v3644_v37 = vsel %vm6367_vm4, %v3639_v9, %v7121_v35  ;;  %v5302_v30 = vld [vmem:[%s6341_s25 + $0x54] sm:$0xf]  ;;  %v7208_v24 = vld [vmem:[%s6341_s25 + $0x58] sm:$0xf]  ;;  %v7213_v61 = vld [vmem:[%s6341_s25 + $0x90] sm:$0xe] }
  0xcb   : > { %v7204_v12 = vsel %vm6593_vm7, %v4973_v25, %v1294_v6  ;;  %v3658_v50 = vrot.slane %v3656_v8, 4  ;;  %v3661_v52 = vrot.slane %v3659_v43, 5  ;;  %v3671_v46 = vrot.slane %v3669_v38, 4 }
  0xcc   : > { %5809 = vmatmul.mubr.msk.bf16.gmra.mrb[12].mxu0 %vm658_vm3, %v6196_v33  ;;  %v8137_v33 = vcombine.low %v6957_v0, %v6976_v23  ;;  %v6251_v0 = vld [vmem:[%s6341_s25 + $0x8c] sm:$0x1]  ;;  %v3654_v36 = vsel %vm6367_vm4, %v3649_v16, %v3653_v5  ;;  %v3704_v25 = vshrl.u32 %v5302_v30, 16  ;;  %v3707_v8 = vshll.u32 %v5302_v30, 16 }
  0xcd   : > { %5655 = vmatmul.mubr.msk.bf16.gmra.mrb[28].mxu1 %vm658_vm3, %v8136_v62  ;;  %5812 = vmatprep.mubr.msk.bf16.mxu0 %vm658_vm3, %v6197_v48  ;;  %v3665_v48 = vshll.u32 %v7154_v7, 16  ;;  %v1297_v23 = vrot.slane %v6251_v0, 5  ;;  %v5299_v62 = vld [vmem:[%s6341_s25 + $0x48] sm:$0xf]  ;;  %v7197_v0 = vld [vmem:[%s6341_s25 + $0x4c] sm:$0xf]  ;;  %v8139_v38 = vcombine.low %v6961_v29, %v6965_v53  ;;  %v7231_v16 = vcombine.low %v3620_v31, %v3630_v26 }
  0xce   : > { %5660 = vmatprep.mubr.msk.bf16.mxu1 %vm658_vm3, %v8137_v33  ;;  %v7194_v33 = vld [vmem:[%s6341_s25 + $0x44] sm:$0x1]  ;;  %v3680_v27 = vshrl.u32 %v5299_v62, 16  ;;  %v3683_v15 = vshll.u32 %v5299_v62, 16  ;;  %v3689_v6 = vshll.u32 %v7197_v0, 16  ;;  %v3693_v9 = vshrl.u32 %v7197_v0, 16 }
  0xcf   : > { %8138 = vst [vmem:[#allocation8_spill] sm:$0xff] %v7194_v33  ;;  %v7210_v28 = vrot.slane %v3665_v48, 5  ;;  %v7219_v35 = vsel %vm6593_vm7, %v1296_v54, %v1297_v23  ;;  %v3713_v43 = vshll.u32 %v7208_v24, 16  ;;  %v3717_v48 = vshrl.u32 %v7208_v24, 16  ;;  %v5305_v31 = vld [vmem:[%s6341_s25 + $0x60] sm:$0xf] }
  0xd0   : > { %v3675_v5 = vshll.u32 %v7194_v33, 16  ;;  %v4974_v54 = vrot.slane %v7213_v61, 9  ;;  %v8140_v23 = vcombine.low %v7002_v34, %v7018_v4  ;;  %v7242_v29 = vcombine.low %v3644_v37, %v3654_v36  ;;  %v6200_v26 = vld [vmem:[%s6341_s25 + $0x9c] sm:$0xff]   ;;  %v6201_v30 = vld [vmem:[%s6341_s25 + $0xa8] sm:$0xff]   ;;  %v6252_v36 = vld [vmem:[%s8108_s1 + $0x10] sm:$0xf] }
  0xd1   : > { %v3662_v53 = vor.u32 %v3661_v52, %v3658_v50  ;;  %v3682_v62 = vrot.slane %v3680_v27, 4  ;;  %v7253_v34 = vrot.slane %v3689_v6, 5  ;;  %v3695_v4 = vrot.slane %v3693_v9, 4  ;;  %v6253_v6 = vld [vmem:[%s6341_s25 + $0x94] sm:$0xf] }
  0xd2   : > { %v3706_v27 = vrot.slane %v3704_v25, 4  ;;  %v3709_v37 = vrot.slane %v3707_v8, 5  ;;  %v7262_v50 = vrot.slane %v3713_v43, 5  ;;  %v3719_v52 = vrot.slane %v3717_v48, 4  ;;  %v7268_v9 = vld [vmem:[%s6341_s25 + $0x64] sm:$0xf] }
  0xd3   : > { %8141 = vst [vmem:[#allocation9_spill] sm:$0xff] %v7268_v9  ;;  %v3728_v61 = vshrl.u32 %v5305_v31, 16  ;;  %v7270_v22 = vrot.slane %v3662_v53, 4  ;;  %v1308_v25 = vrot.slane %v6255_v18, 5  ;;  %v3696_v43 = vor.u32 %v3695_v4, %v7253_v34 }
  0xd4   : > { %5813 = vmatmul.mubr.msk.bf16.gmra.mrb[16].mxu0 %vm658_vm3, %v6198_v10  ;;  %v3731_v10 = vshll.u32 %v5305_v31, 16  ;;  %v3710_v31 = vor.u32 %v3709_v37, %v3706_v27  ;;  %v3720_v53 = vor.u32 %v3719_v52, %v7262_v50  ;;  %v8142_v18 = vcombine.low %v7009_v19, %v7022_v58  ;;  %v6202_v37 = vld [vmem:[%s6341_s25 + $0xb4] sm:$0xff]  }
  0xd5   : > { %5661 = vmatmul.mubr.msk.bf16.vlgmr.msra.gmra.mrb[0].mxu1 %vm658_vm3, %v8139_v38  ;;  %5816 = vmatprep.mubr.msk.bf16.mxu0 %vm658_vm3, %v6199_v21  ;;  %v3685_v21 = vrot.slane %v3683_v15, 5  ;;  %v7251_v38 = vld [vmem:[%s6341_s25 + $0x50] sm:$0x1]  ;;  %v7260_v15 = vld [vmem:[%s6341_s25 + $0x5c] sm:$0x1]  ;;  %v8143_v27 = vcombine.low %v7027_v2, %v7031_v1  ;;  %v1310_v52 = vrot.slane %v1308_v25, 4 }
  0xd6   : > { %5693 = vmatpush3.bf16.msra.mxu1 %v6998_v49  ;;  %5664 = vmatprep.mubr.msk.bf16.mxu1 %vm658_vm3, %v8140_v23  ;;  %v3672_v49 = vor.u32 %v3671_v46, %v7210_v28  ;;  %v7264_v46 = vrot.slane %v3675_v5, 5  ;;  %v1301_v23 = vrot.slane %v6253_v6, 5  ;;  %v3699_v48 = vshll.u32 %v7251_v38, 16  ;;  %v1177_v5 = vld [vmem:[%s6341_s25 + $0x9c] sm:$0xe] }
  0xd7   : > { %6159 = vmatprep.subr.msk.bf16.mxu1 %vm707_vm0, %v6252_v36  ;;  %v6254_v36 = vld [vmem:[%s6341_s25 + $0x98] sm:$0x1]  ;;  %v3686_v7 = vor.u32 %v3685_v21, %v3682_v62  ;;  %v3723_v6 = vshll.u32 %v7260_v15, 16  ;;  %v3741_v62 = vshrl.u32 %v7268_v9, 16  ;;  %v3733_v4 = vrot.slane %v3731_v10, 5 }
  0xd8   : > { %v1304_v33 = vrot.slane %v6254_v36, 5  ;;  %v3673_v8 = vrot.slane %v3672_v49, 4  ;;  %v3737_v36 = vshll.u32 %v7268_v9, 16  ;;  %v7289_v21 = vsel %vm6593_vm7, %v4974_v54, %v1301_v23  ;;  %v7300_v2 = vld [vmem:[%s6341_s25 + $0x68] sm:$0x1] }
  0xd9   : > { %v3730_v49 = vrot.slane %v3728_v61, 4  ;;  %v3687_v19 = vrot.slane %v3686_v7, 4  ;;  %v4975_v58 = vrot.slane %v1177_v5, 9  ;;  %v3697_v3 = vrot.slane %v3696_v43, 4  ;;  %8144 = vst [vmem:[#allocation10_spill] sm:$0xff] %v7300_v2  ;;  %v6203_v5 = vld [vmem:[%s6341_s25 + $0xc0] sm:$0xff]  }
  0xda   : > { %v3701_v54 = vrot.slane %v3699_v48, 5  ;;  %v3725_v63 = vrot.slane %v3723_v6, 5  ;;  %v1315_v61 = vrot.slane %v6735_v56, 5  ;;  %v3711_v10 = vrot.slane %v3710_v31, 4  ;;  %v1179_v31 = vld [vmem:[%s6341_s25 + $0xb4] sm:$0xe] }
  0xdb   : > { %v3721_v51 = vrot.slane %v3720_v53, 4  ;;  %v7302_v1 = vrot.slane %v3737_v36, 5  ;;  %v3743_v7 = vrot.slane %v3741_v62, 4  ;;  %v3668_v43 = vsel %vm6367_vm4, %v7270_v22, %v7210_v28  ;;  %v6257_v62 = vld [vmem:[%s6341_s25 + $0xb0] sm:$0x1] }
  0xdc   : > { %5817 = vmatmul.mubr.msk.bf16.gmra.mrb[20].mxu0 %vm658_vm3, %v6200_v26  ;;  %v1303_v26 = vrot.slane %v1301_v23, 4  ;;  %v1178_v23 = vld [vmem:[%s6341_s25 + $0xa8] sm:$0xe]  ;;  %v3678_v48 = vsel %vm6367_vm4, %v3673_v8, %v7264_v46  ;;  %v3734_v6 = vor.u32 %v3733_v4, %v3730_v49  ;;  %v3692_v53 = vsel %vm6367_vm4, %v3687_v19, %v7253_v34  ;;  %v5308_v46 = vld [vmem:[%s6341_s25 + $0x6c] sm:$0xf] }
  0xdd   : > { %5665 = vmatmul.mubr.msk.bf16.gmra.mrb[4].mxu1 %vm658_vm3, %v8142_v18  ;;  %5820 = vmatprep.mubr.msk.bf16.mxu0 %vm658_vm3, %v6201_v30  ;;  %v6256_v18 = vld [vmem:[%s6341_s25 + $0xa4] sm:$0x1]  ;;  %v7322_v36 = vsel %vm6593_vm7, %v4975_v58, %v1308_v25  ;;  %v4976_v28 = vrot.slane %v1178_v23, 9  ;;  %v1317_v8 = vrot.slane %v1315_v61, 4  ;;  %v3747_v49 = vshll.u32 %v7300_v2, 16 }
  0xde   : > { %5668 = vmatprep.mubr.msk.bf16.mxu1 %vm658_vm3, %v8143_v27  ;;  %v1311_v30 = vrot.slane %v6256_v18, 5  ;;  %v7314_v56 = vsel %vm6593_vm7, %v1303_v26, %v1304_v33  ;;  %v3702_v33 = vsel %vm6367_vm4, %v3697_v3, %v3701_v54  ;;  %v1318_v26 = vrot.slane %v6257_v62, 5  ;;  %v5311_v18 = vld [vmem:[%s6341_s25 + $0x78] sm:$0xf]  ;;  %v7377_v54 = vld [vmem:[%s6341_s25 + $0xbc] sm:$0x1] }
  0xdf   : > { %v3716_v34 = vsel %vm6367_vm4, %v3711_v10, %v7262_v50  ;;  %v3726_v25 = vsel %vm6367_vm4, %v3721_v51, %v3725_v63  ;;  %v3744_v4 = vor.u32 %v3743_v7, %v7302_v1  ;;  %v4977_v27 = vrot.slane %v1179_v31, 9  ;;  %v7351_v51 = vld [vmem:[%s6341_s25 + $0x70] sm:$0xf]  ;;  %v7381_v10 = vld [vmem:[%s6341_s25 + $0x7c] sm:$0xf] }
  0xe0   : > { %v7326_v22 = vsel %vm6593_vm7, %v1310_v52, %v1311_v30  ;;  %v8146_v3 = vcombine.low %v7044_v45, %v7048_v59  ;;  %v7347_v19 = vrot.slane %v3734_v6, 4  ;;  %v1322_v50 = vrot.slane %v6759_v42, 5  ;;  %8147 = vst [vmem:[#allocation12_spill] sm:$0xff] %v7351_v51  ;;  %8149 = vst [vmem:[#allocation13_spill] sm:$0xff] %v7381_v10  ;;  %v5314_v7 = vld [vmem:[%s6341_s25 + $0x84] sm:$0xf] }
  0xe1   : > { %8145 = vst [vmem:[#allocation11_spill] sm:$0xff] %v7326_v22  ;;  %v3752_v63 = vshrl.u32 %v5308_v46, 16  ;;  %v8148_v45 = vcombine.low %v7052_v47, %v7079_v41  ;;  %v7359_v58 = vcombine.low %v3692_v53, %v3702_v33  ;;  %v7365_v42 = vsel %vm6593_vm7, %v4976_v28, %v1315_v61  ;;  %v6204_v61 = vld [vmem:[%s6341_s25 + $0xcc] sm:$0xff]   ;;  %v7393_v31 = vld [vmem:[%s6341_s25 + $0x88] sm:$0xf] }
  0xe2   : > { %v7368_v30 = vcombine.low %v3716_v34, %v3726_v25  ;;  %v7372_v47 = vsel %vm6593_vm7, %v1317_v8, %v1318_v26  ;;  %v7374_v41 = vrot.slane %v3747_v49, 5  ;;  %v3761_v6 = vshll.u32 %v7351_v51, 16  ;;  %8150 = vst [vmem:[#allocation14_spill] sm:$0xff] %v7393_v31  ;;  %v5317_v62 = vld [vmem:[%s6341_s25 + $0x90] sm:$0xf] }
  0xe3   : > { %v7399_v28 = vrot.slane %v1322_v50, 4  ;;  %v7401_v33 = vrot.slane %v3752_v63, 4  ;;  %v3765_v8 = vshrl.u32 %v7351_v51, 16  ;;  %v3776_v26 = vshrl.u32 %v5311_v18, 16  ;;  %v7408_v25 = vld [vmem:[%s6341_s25 + $0x94] sm:$0xf] }
  0xe4   : > { %5821 = vmatmul.mubr.msk.bf16.gmra.mrb[24].mxu0 %vm658_vm3, %v6202_v37  ;;  %v7345_v37 = vcombine.low %v3668_v43, %v3678_v48  ;;  %v7389_v43 = vsel %vm6593_vm7, %v4977_v27, %v1322_v50  ;;  %v3755_v48 = vshll.u32 %v5308_v46, 16  ;;  %v3779_v49 = vshll.u32 %v5311_v18, 16  ;;  %8151 = vst [vmem:[#allocation15_spill] sm:$0xff] %v7408_v25  ;;  %v7446_v2 = vld [vmem:[%s6341_s25 + $0x8c] sm:$0x1] }
  0xe5   : > { %5669 = vmatmul.mubr.msk.bf16.gmra.mrb[8].mxu1 %vm658_vm3, %v8146_v3  ;;  %5824 = vmatprep.mubr.msk.bf16.mxu0 %vm658_vm3, %v6203_v5  ;;  %v7385_v5 = vrot.slane %v3744_v4, 4  ;;  %v3785_v46 = vshll.u32 %v7381_v10, 16  ;;  %v3789_v34 = vshrl.u32 %v7381_v10, 16  ;;  %v3800_v4 = vshrl.u32 %v5314_v7, 16 }
  0xe6   : > { %5672 = vmatprep.mubr.msk.bf16.mxu1 %vm658_vm3, %v8148_v45  ;;  %v3803_v27 = vshll.u32 %v5314_v7, 16  ;;  %v3809_v3 = vshll.u32 %v7393_v31, 16  ;;  %v3813_v50 = vshrl.u32 %v7393_v31, 16  ;;  %v7418_v45 = vld [vmem:[%s6341_s25 + $0x74] sm:$0x1]  ;;  %v3757_v18 = vrot.slane %v3755_v48, 5 }
  0xe7   : > { %v3824_v52 = vshrl.u32 %v5317_v62, 16  ;;  %v3827_v53 = vshll.u32 %v5317_v62, 16  ;;  %v8152_v7 = vcombine.low %v7063_v60, %v7088_v44  ;;  %v3767_v59 = vrot.slane %v3765_v8, 4  ;;  %v5320_v48 = vld [vmem:[%s6341_s25 + $0x9c] sm:$0xf] }
  0xe8   : > { %v3833_v63 = vshll.u32 %v7408_v25, 16  ;;  %v3837_v23 = vshrl.u32 %v7408_v25, 16  ;;  %v8153_v62 = vcombine.low %v7103_v17, %v7107_v57  ;;  %v7436_v44 = vld [vmem:[%s6341_s25 + $0x80] sm:$0x1]  ;;  %v3778_v60 = vrot.slane %v3776_v26, 4 }
  0xe9   : > { %8154 = vst [vmem:[#allocation16_spill] sm:$0xff] %v7436_v44  ;;  %v3802_v31 = vrot.slane %v3800_v4, 4  ;;  %v3805_v8 = vrot.slane %v3803_v27, 5  ;;  %v7440_v10 = vrot.slane %v3809_v3, 5  ;;  %v3815_v51 = vrot.slane %v3813_v50, 4 }
  0xea   : > { %v7443_v25 = vld [vmem:[%s6341_s25 + $0xa0] sm:$0xf]  ;;  %v3826_v17 = vrot.slane %v3824_v52, 4  ;;  %v3829_v57 = vrot.slane %v3827_v53, 5  ;;  %v3851_v9 = vshll.u32 %v5320_v48, 16  ;;  %v3758_v26 = vor.u32 %v3757_v18, %v7401_v33 }
  0xeb   : > { %v3795_v27 = vshll.u32 %v7436_v44, 16  ;;  %v7455_v3 = vld [vmem:[%s6341_s25 + $0x98] sm:$0x1]  ;;  %v3857_v50 = vshll.u32 %v7443_v25, 16  ;;  %v3861_v52 = vshrl.u32 %v7443_v25, 16  ;;  %v3806_v22 = vor.u32 %v3805_v8, %v3802_v31 }
  0xec   : > { %5825 = vmatmul.mubr.msk.bf16.gmra.mrb[28].mxu0 %vm658_vm3, %v6204_v61  ;;  %v7426_v61 = vrot.slane %v3761_v6, 5  ;;  %v3791_v6 = vrot.slane %v3789_v34, 4  ;;  %v3839_v34 = vrot.slane %v3837_v23, 4  ;;  %v3819_v33 = vshll.u32 %v7446_v2, 16 }
  0xed   : > { %5673 = vmatmul.mubr.msk.bf16.gmra.mrb[12].mxu1 %vm658_vm3, %v8152_v7  ;;  %5830 = vmatprep.mubr.msk.bf16.mxu0 %vm658_vm3, %v7168_v20  ;;  %v3781_v7 = vrot.slane %v3779_v49, 5  ;;  %v7438_v20 = vrot.slane %v3785_v46, 5  ;;  %v3771_v49 = vshll.u32 %v7418_v45, 16  ;;  %v7450_v46 = vrot.slane %v3833_v63, 5 }
  0xee   : > { %5676 = vmatprep.mubr.msk.bf16.mxu1 %vm658_vm3, %v8153_v62  ;;  %v3848_v62 = vshrl.u32 %v5320_v48, 16  ;;  %v3768_v4 = vor.u32 %v3767_v59, %v7426_v61  ;;  %v3816_v23 = vor.u32 %v3815_v51, %v7440_v10  ;;  %v3830_v59 = vor.u32 %v3829_v57, %v3826_v17  ;;  %v7488_v57 = vld [vmem:[%s6341_s25 + $0xa4] sm:$0x1] }
  0xef   : > { %v3782_v53 = vor.u32 %v3781_v7, %v3778_v60  ;;  %v3792_v48 = vor.u32 %v3791_v6, %v7438_v20  ;;  %v3853_v18 = vrot.slane %v3851_v9, 5  ;;  %v8155_v44 = vcombine.low %v7115_v11, %v7119_v40 }
  0xf0   : > { %v3850_v63 = vrot.slane %v3848_v62, 4  ;;  %v8156_v31 = vrot.slane %v7377_v54, 5  ;;  %v3773_v51 = vrot.slane %v3771_v49, 5  ;;  %v3840_v60 = vor.u32 %v3839_v34, %v7450_v46  ;;  %v7491_v34 = vld [vmem:[%s6341_s25 + $0xac] sm:$0xf] }
  0xf1   : > { %v3843_v9 = vshll.u32 %v7455_v3, 16  ;;  %v8157_v11 = vcombine.low %v7187_v39, %v7191_v55  ;;  %v3759_v40 = vrot.slane %v3758_v26, 4  ;;  %v7484_v54 = vrot.slane %v3857_v50, 5 }
  0xf2   : > { %v3783_v7 = vrot.slane %v3782_v53, 4  ;;  %v3793_v6 = vrot.slane %v3792_v48, 4  ;;  %v3797_v8 = vrot.slane %v3795_v27, 5  ;;  %v3821_v17 = vrot.slane %v3819_v33, 5  ;;  %v7501_v48 = vld [vmem:[%s6341_s25 + $0xb0] sm:$0x1] }
  0xf3   : > { %v3807_v39 = vrot.slane %v3806_v22, 4  ;;  %v3817_v55 = vrot.slane %v3816_v23, 4  ;;  %v3831_v62 = vrot.slane %v3830_v59, 4  ;;  %v3854_v49 = vor.u32 %v3853_v18, %v3850_v63 }
  0xf4   : > { %5831 = vmatmul.mubr.msk.bf16.vlgmr.msra.gmra.mrb[0].mxu0 %vm658_vm3, %v7231_v16  ;;  %v7474_v16 = vsel %vm6593_vm7, %v7399_v28, %v8156_v31  ;;  %v3863_v28 = vrot.slane %v3861_v52, 4  ;;  %v3845_v26 = vrot.slane %v3843_v9, 5  ;;  %v3764_v52 = vsel %vm6367_vm4, %v3759_v40, %v7426_v61 }
  0xf5   : > { %5677 = vmatmul.mubr.msk.bf16.gmra.mrb[16].mxu1 %vm658_vm3, %v8155_v44  ;;  %5863 = vmatpush3.bf16.msra.mxu0 %v7172_v14  ;;  %v3769_v14 = vrot.slane %v3768_v4, 4  ;;  %v5323_v44 = vld [vmem:[%s6341_s25 + $0xa8] sm:$0xf]  ;;  %v3867_v22 = vshll.u32 %v7488_v57, 16  ;;  %v3788_v33 = vsel %vm6367_vm4, %v3783_v7, %v7438_v20  ;;  %v3798_v23 = vsel %vm6367_vm4, %v3793_v6, %v3797_v8 }
  0xf6   : > { %5680 = vmatprep.mubr.msk.bf16.mxu1 %vm658_vm3, %v8157_v11  ;;  %5834 = vmatprep.mubr.msk.bf16.mxu0 %vm658_vm3, %v7242_v29  ;;  %v3841_v29 = vrot.slane %v3840_v60, 4  ;;  %v3872_v4 = vshrl.u32 %v5323_v44, 16  ;;  %v3875_v50 = vshll.u32 %v5323_v44, 16  ;;  %v3864_v53 = vor.u32 %v3863_v28, %v7484_v54  ;;  %v5372_v11 = vld [vmem:[%s6341_s25 + $0x48] sm:$0xe] }
  0xf7   : > { %v3774_v27 = vsel %vm6367_vm4, %v3769_v14, %v3773_v51  ;;  %v3881_v59 = vshll.u32 %v7491_v34, 16  ;;  %v3885_v61 = vshrl.u32 %v7491_v34, 16  ;;  %v3812_v63 = vsel %vm6367_vm4, %v3807_v39, %v7440_v10  ;;  %v7566_v39 = vld [vmem:[%s6341_s25 + $0xb8] sm:$0xf] }
  0xf8   : > { %v3822_v18 = vsel %vm6367_vm4, %v3817_v55, %v3821_v17  ;;  %v3836_v20 = vsel %vm6367_vm4, %v3831_v62, %v7450_v46  ;;  %v3855_v31 = vrot.slane %v3854_v49, 4  ;;  %v8158_v51 = vcombine.low %v7204_v12, %v7219_v35 }
  0xf9   : > { %v3874_v10 = vrot.slane %v3872_v4, 4  ;;  %v3877_v60 = vrot.slane %v3875_v50, 5  ;;  %v3891_v9 = vshll.u32 %v7501_v48, 16  ;;  %v8159_v46 = vcombine.low %v7289_v21, %v7314_v56  ;;  %v5326_v21 = vld [vmem:[%s6341_s25 + $0xb4] sm:$0xf] }
  0xfa   : > { %v4993_v12 = vcombine.low %v7365_v42, %v7372_v47  ;;  %v8160_v35 = vsel %vm6367_vm4, %v7385_v5, %v7374_v41  ;;  %v3865_v14 = vrot.slane %v3864_v53, 4  ;;  %v3869_v28 = vrot.slane %v3867_v22, 5  ;;  %v5374_v4 = vld [vmem:[%s6341_s25 + $0x60] sm:$0xe]  ;;  %v5375_v53 = vld [vmem:[%s6341_s25 + $0x6c] sm:$0xe] }
  0xfb   : > { %v4994_v56 = vcombine.low %v7389_v43, %v7474_v16  ;;  %v7549_v44 = vcombine.low %v3764_v52, %v3774_v27  ;;  %v7551_v42 = vrot.slane %v3881_v59, 5  ;;  %v3887_v47 = vrot.slane %v3885_v61, 4  ;;  %v8169_v16 = vld [vmem:[#allocation4_spill] sm:$0xff] }
  0xfc   : > { %5835 = vmatmul.mubr.msk.bf16.gmra.mrb[4].mxu0 %vm658_vm3, %v7345_v37  ;;  %v3846_v37 = vsel %vm6367_vm4, %v3841_v29, %v3845_v26  ;;  %v7553_v41 = vcombine.low %v3788_v33, %v3798_v23  ;;  %v7555_v5 = vcombine.low %v3812_v63, %v3822_v18  ;;  %v3860_v6 = vsel %vm6367_vm4, %v3855_v31, %v7484_v54  ;;  %v8162_v23 = vld [vmem:[#allocation11_spill] sm:$0xff]  ;;  %v5329_v63 = vld [vmem:[%s6341_s25 + $0xc0] sm:$0xf]  ;;  %v8164_v18 = vld [vmem:[#allocation9_spill] sm:$0xff] }
  0xfd   : > { %5681 = vmatmul.mubr.msk.bf16.gmra.mrb[20].mxu1 %vm658_vm3, %v8158_v51  ;;  %5838 = vmatprep.mubr.msk.bf16.mxu0 %vm658_vm3, %v7359_v58  ;;  %v8161_v58 = vsel %vm6367_vm4, %v7347_v19, %v7302_v1  ;;  %v7557_v7 = vcombine.low %v3836_v20, %v3846_v37  ;;  %v5388_v1 = vrot.slane %v5372_v11, 9  ;;  %v5373_v19 = vld [vmem:[%s6341_s25 + $0x54] sm:$0xe]  ;;  %v3878_v8 = vor.u32 %v3877_v60, %v3874_v10  ;;  %v8165_v31 = vld [vmem:[#allocation10_spill] sm:$0xff] }
  0xfe   : > { %5684 = vmatprep.mubr.msk.bf16.mxu1 %vm658_vm3, %v8159_v46  ;;  %v5342_v40 = vcombine.low %v8161_v58, %v8160_v35  ;;  %v7563_v17 = vrot.slane %v3891_v9, 5  ;;  %v3896_v55 = vshrl.u32 %v5326_v21, 16  ;;  %v3870_v62 = vsel %vm6367_vm4, %v3865_v14, %v3869_v28  ;;  %v8166_v9 = vld [vmem:[#allocation12_spill] sm:$0xff]  ;;  %v7615_v35 = vld [vmem:[%s6341_s25 + $0xbc] sm:$0x1] }
  0xff   : > { %v3899_v49 = vshll.u32 %v5326_v21, 16  ;;  %v4355_v29 = vrot.slane %v7197_v0, 5  ;;  %v4358_v26 = vrot.slane %v7251_v38, 5  ;;  %v3888_v50 = vor.u32 %v3887_v47, %v7551_v42  ;;  %v7618_v58 = vld [vmem:[%s6341_s25 + $0xc4] sm:$0xf] }
 0x100   : > { %v5389_v52 = vrot.slane %v5373_v19, 9  ;;  %v4362_v54 = vrot.slane %v7208_v24, 5  ;;  %v4365_v27 = vrot.slane %v7260_v15, 5  ;;  %v3905_v22 = vshll.u32 %v7566_v39, 16  ;;  %v5376_v19 = vld [vmem:[%s6341_s25 + $0x78] sm:$0xe] }
 0x101   : > { %v3909_v33 = vshrl.u32 %v7566_v39, 16  ;;  %v7583_v0 = vsel %vm6593_vm7, %v5388_v1, %v4355_v29  ;;  %v4357_v38 = vrot.slane %v4355_v29, 4  ;;  %v8163_v59 = vcombine.low %v7322_v36, %v8162_v23  ;;  %v8167_v23 = vld [vmem:[#allocation13_spill] sm:$0xff] }
 0x102   : > { %v7590_v24 = vcombine.low %v3860_v6, %v3870_v62  ;;  %v7594_v15 = vsel %vm6593_vm7, %v5389_v52, %v4362_v54  ;;  %v5390_v61 = vrot.slane %v5374_v4, 9  ;;  %v4369_v20 = vrot.slane %v8164_v18, 5  ;;  %v6205_v6 = vld [vmem:[%s6341_s25 + $0xc] sm:$0xff]  }
 0x103   : > { %v7600_v36 = vsel %vm6593_vm7, %v4357_v38, %v4358_v26  ;;  %v4372_v51 = vrot.slane %v8165_v31, 5  ;;  %v5391_v37 = vrot.slane %v5375_v53, 9  ;;  %v4376_v11 = vrot.slane %v8166_v9, 5 }
 0x104   : > { %5839 = vmatmul.mubr.msk.bf16.gmra.mrb[8].mxu0 %vm658_vm3, %v7368_v30  ;;  %v4364_v30 = vrot.slane %v4362_v54, 4  ;;  %v5405_v10 = vcombine.low %v7583_v0, %v7600_v36  ;;  %v4379_v46 = vrot.slane %v7418_v45, 5  ;;  %v7624_v14 = vsel %vm6593_vm7, %v5390_v61, %v4369_v20 }
 0x105   : > { %5685 = vmatmul.mubr.msk.bf16.gmra.mrb[24].mxu1 %vm658_vm3, %v8163_v59  ;;  %5842 = vmatprep.mubr.msk.bf16.mxu0 %vm658_vm3, %v5342_v40  ;;  %v4371_v28 = vrot.slane %v4369_v20, 4  ;;  %v7626_v21 = vrot.slane %v3896_v55, 4  ;;  %v3920_v47 = vshrl.u32 %v5329_v63, 16  ;;  %v7630_v45 = vsel %vm6593_vm7, %v5391_v37, %v4376_v11  ;;  %v5103_v55 = vld [vmem:[%s6341_s25 + $0x78] sm:$0xf]  ;;  %v8168_v59 = vld [vmem:[#allocation16_spill] sm:$0xff] }
 0x106   : > { %5688 = vmatprep.mubr.msk.bf16.mxu1 %vm658_vm3, %v4993_v12  ;;  %v7608_v60 = vsel %vm6593_vm7, %v4364_v30, %v4365_v27  ;;  %v7612_v12 = vrot.slane %v3878_v8, 4  ;;  %v4378_v1 = vrot.slane %v4376_v11, 4  ;;  %v7634_v8 = vrot.slane %v3888_v50, 4 }
 0x107   : > { %v5406_v40 = vcombine.low %v7594_v15, %v7608_v60  ;;  %v7636_v62 = vrot.slane %v3899_v49, 5  ;;  %v3923_v29 = vshll.u32 %v5329_v63, 16  ;;  %v7640_v26 = vsel %vm6593_vm7, %v4371_v28, %v4372_v51  ;;  %v8171_v28 = vld [vmem:[#allocation14_spill] sm:$0xff] }
 0x108   : > { %v7643_v4 = vrot.slane %v3905_v22, 5  ;;  %v7645_v52 = vrot.slane %v3909_v33, 4  ;;  %v5407_v54 = vcombine.low %v7624_v14, %v7640_v26  ;;  %v7651_v27 = vsel %vm6593_vm7, %v4378_v1, %v4379_v46  ;;  %v5377_v33 = vld [vmem:[%s6341_s25 + $0x84] sm:$0xe]  ;;  %v6206_v1 = vld [vmem:[%s6341_s25 + $0x18] sm:$0xff]  }
 0x109   : > { %v3915_v49 = vshll.u32 %v7615_v35, 16  ;;  %v3929_v50 = vshll.u32 %v7618_v58, 16  ;;  %v5408_v53 = vcombine.low %v7630_v45, %v7651_v27  ;;  %v5392_v22 = vrot.slane %v5376_v19, 9  ;;  %v6268_v60 = vld [vmem:[%s6341_s25 + $0xa0] sm:$0xf] }
 0x10a   : > { %v3922_v38 = vrot.slane %v3920_v47, 4  ;;  %v4386_v30 = vrot.slane %v8168_v59, 5  ;;  %v2245_v61 = vshrl.u32 %v5103_v55, 16  ;;  %v3925_v63 = vrot.slane %v3923_v29, 5  ;;  %v5332_v29 = vld [vmem:[%s6341_s25 + $0xcc] sm:$0xf] }
 0x10b   : > { %v3933_v18 = vshrl.u32 %v7618_v58, 16  ;;  %v2248_v43 = vshll.u32 %v5103_v55, 16  ;;  %v5393_v37 = vrot.slane %v5377_v33, 9  ;;  %v3884_v9 = vsel %vm6367_vm4, %v7612_v12, %v7551_v42  ;;  %v7694_v55 = vld [vmem:[%s6341_s25 + $0xd0] sm:$0xf] }
 0x10c   : > { %5843 = vmatmul.mubr.msk.bf16.gmra.mrb[12].mxu0 %vm658_vm3, %v7549_v44  ;;  %v4383_v44 = vrot.slane %v8167_v23, 5  ;;  %v2247_v51 = vrot.slane %v2245_v61, 4  ;;  %v3902_v11 = vor.u32 %v7636_v62, %v7626_v21  ;;  %v4390_v47 = vrot.slane %v8171_v28, 5  ;;  %v6207_v21 = vld [vmem:[%s6341_s25 + $0x24] sm:$0xff]   ;;  %v6272_v27 = vld [vmem:[%s6341_s25 + $0xac] sm:$0xf] }
 0x10d   : > { %5689 = vmatmul.mubr.msk.bf16.gmra.mrb[28].mxu1 %vm658_vm3, %v4994_v56  ;;  %5846 = vmatprep.mubr.msk.bf16.mxu0 %vm658_vm3, %v7553_v41  ;;  %v8170_v56 = vld [vmem:[#allocation5_spill] sm:$0xff]  ;;  %v2250_v46 = vrot.slane %v2248_v43, 5  ;;  %v3894_v19 = vsel %vm6367_vm4, %v7634_v8, %v7563_v17  ;;  %v4393_v12 = vrot.slane %v7446_v2, 5  ;;  %v7702_v62 = vrot.slane %v3929_v50, 5  ;;  %v5378_v8 = vld [vmem:[%s6341_s25 + $0x90] sm:$0xe] }
 0x10e   : > { %5694 = vmatprep.mubr.msk.bf16.mxu1 %vm658_vm3, %v6205_v6  ;;  %v2267_v41 = vsel %vm6367_vm4, %v8170_v56, %v8169_v16  ;;  %v7676_v20 = vsel %vm6593_vm7, %v5392_v22, %v4383_v44  ;;  %v4385_v31 = vrot.slane %v4383_v44, 4  ;;  %v3912_v6 = vor.u32 %v7645_v52, %v7643_v4  ;;  %v7708_v52 = vld [vmem:[%s6341_s25 + $0xc8] sm:$0x1]  ;;  %v8173_v16 = vld [vmem:[#allocation2_spill] sm:$0xff] }
 0x10f   : > { %v3935_v22 = vrot.slane %v3933_v18, 4  ;;  %v2251_v17 = vor.u32 %v2250_v46, %v2247_v51  ;;  %v3917_v23 = vrot.slane %v3915_v49, 5  ;;  %v3926_v44 = vor.u32 %v3925_v63, %v3922_v38  ;;  %v8174_v51 = vld [vmem:[#allocation3_spill] sm:$0xff] }
 0x110   : > { %v7698_v42 = vsel %vm6593_vm7, %v4385_v31, %v4386_v30  ;;  %v7712_v59 = vsel %vm6593_vm7, %v5393_v37, %v4390_v47  ;;  %v4392_v30 = vrot.slane %v4390_v47, 4  ;;  %v3944_v2 = vshrl.u32 %v5332_v29, 16 }
 0x111   : > { %v5409_v33 = vcombine.low %v7676_v20, %v7698_v42  ;;  %v3947_v50 = vshll.u32 %v5332_v29, 16  ;;  %v3953_v61 = vshll.u32 %v7694_v55, 16  ;;  %v2252_v18 = vrot.slane %v2251_v17, 4  ;;  %v6208_v29 = vld [vmem:[%s6341_s25 + $0x30] sm:$0xff]  }
 0x112   : > { %v3957_v49 = vshrl.u32 %v7694_v55, 16  ;;  %v7723_v38 = vsel %vm6593_vm7, %v4392_v30, %v4393_v12  ;;  %v5394_v63 = vrot.slane %v5378_v8, 9  ;;  %v3936_v56 = vor.u32 %v3935_v22, %v7702_v62 }
 0x113   : > { %v3939_v31 = vshll.u32 %v7708_v52, 16  ;;  %v5410_v37 = vcombine.low %v7712_v59, %v7723_v38  ;;  %v5348_v46 = vcombine.low %v3884_v9, %v3894_v19  ;;  %v3903_v28 = vrot.slane %v3902_v11, 4  ;;  %v5379_v11 = vld [vmem:[%s6341_s25 + $0x9c] sm:$0xe] }
 0x114   : > { %5847 = vmatmul.mubr.msk.bf16.gmra.mrb[16].mxu0 %vm658_vm3, %v7555_v5  ;;  %v8172_v5 = vld [vmem:[#allocation15_spill] sm:$0xff]  ;;  %v3913_v47 = vrot.slane %v3912_v6, 4  ;;  %v3927_v12 = vrot.slane %v3926_v44, 4  ;;  %v4400_v8 = vrot.slane %v7455_v3, 5  ;;  %v3946_v30 = vrot.slane %v3944_v2, 4  ;;  %v6209_v19 = vld [vmem:[%s6341_s25 + $0x3c] sm:$0xff]  }
 0x115   : > { %5695 = vmatmul.mubr.msk.bf16.vlgmr.msra.gmra.mrb[0].mxu1 %vm658_vm3, %v6206_v1  ;;  %5850 = vmatprep.mubr.msk.bf16.mxu0 %vm658_vm3, %v7557_v7  ;;  %v4397_v43 = vrot.slane %v8172_v5, 5  ;;  %v2257_v7 = vsel %vm6367_vm4, %v2252_v18, %v8174_v51  ;;  %v3949_v18 = vrot.slane %v3947_v50, 5  ;;  %v7746_v5 = vrot.slane %v3953_v61, 5 }
 0x116   : > { %5897 = vmatpush3.bf16.msra.mxu1 %v8173_v16  ;;  %5698 = vmatprep.mubr.msk.bf16.mxu1 %vm658_vm3, %v6207_v21  ;;  %v7735_v1 = vcombine.low %v2257_v7, %v2267_v41  ;;  %v7739_v21 = vld [vmem:[%s6341_s25 + $0xd4] sm:$0x1]  ;;  %v3959_v9 = vrot.slane %v3957_v49, 4  ;;  %v3937_v41 = vrot.slane %v3936_v56, 4  ;;  %v3941_v6 = vrot.slane %v3939_v31, 5 }
 0x117   : > { %v7743_v22 = vsel %vm6593_vm7, %v5394_v63, %v4397_v43  ;;  %v4399_v17 = vrot.slane %v4397_v43, 4  ;;  %v3908_v63 = vsel %vm6367_vm4, %v3903_v28, %v7643_v4  ;;  %v3918_v2 = vsel %vm6367_vm4, %v3913_v47, %v3917_v23  ;;  %v6259_v16 = vld [vmem:[%s6341_s25 + $0x1c] sm:$0xf]  ;;  %v5380_v28 = vld [vmem:[%s6341_s25 + $0xa8] sm:$0xe] }
 0x118   : > { %v3963_v50 = vshll.u32 %v7739_v21, 16  ;;  %v5395_v61 = vrot.slane %v5379_v11, 9  ;;  %v4404_v49 = vrot.slane %v7443_v25, 5  ;;  %v3932_v4 = vsel %vm6367_vm4, %v3927_v12, %v7702_v62  ;;  %v5368_v62 = vld [vmem:[%s6341_s25 + $0x18] sm:$0xe]  ;;  %v6210_v47 = vld [vmem:[%s6341_s25 + $0x48] sm:$0xff]  }
 0x119   : > { %v7752_v44 = vsel %vm6593_vm7, %v4399_v17, %v4400_v8  ;;  %v3960_v43 = vor.u32 %v3959_v9, %v7746_v5  ;;  %v4407_v23 = vrot.slane %v7488_v57, 5  ;;  %v3942_v25 = vsel %vm6367_vm4, %v3937_v41, %v3941_v6  ;;  %v6260_v11 = vld [vmem:[%s6341_s25 + $0x20] sm:$0x1] }
 0x11a   : > { %v5411_v3 = vcombine.low %v7743_v22, %v7752_v44  ;;  %v4327_v56 = vrot.slane %v6259_v16, 5  ;;  %v7778_v31 = vsel %vm6593_vm7, %v5395_v61, %v4404_v49  ;;  %v4406_v51 = vrot.slane %v4404_v49, 4  ;;  %v5381_v49 = vld [vmem:[%s6341_s25 + $0xb4] sm:$0xe] }
 0x11b   : > { %v5349_v7 = vcombine.low %v3908_v63, %v3918_v2  ;;  %v3961_v17 = vrot.slane %v3960_v43, 4  ;;  %v5396_v41 = vrot.slane %v5380_v28, 9  ;;  %v4411_v6 = vrot.slane %v7491_v34, 5  ;;  %v5369_v2 = vld [vmem:[%s6341_s25 + $0x24] sm:$0xe] }
 0x11c   : > { %5851 = vmatmul.mubr.msk.bf16.gmra.mrb[20].mxu0 %vm658_vm3, %v7590_v24  ;;  %v3950_v24 = vor.u32 %v3949_v18, %v3946_v30  ;;  %v7783_v57 = vsel %vm6593_vm7, %v4406_v51, %v4407_v23  ;;  %v6211_v30 = vld [vmem:[%s6341_s25 + $0x54] sm:$0xff]   ;;  %v5384_v18 = vrot.slane %v5368_v62, 9  ;;  %v4329_v9 = vrot.slane %v4327_v56, 4  ;;  %v6263_v28 = vld [vmem:[%s6341_s25 + $0x2c] sm:$0x1] }
 0x11d   : > { %5699 = vmatmul.mubr.msk.bf16.gmra.mrb[4].mxu1 %vm658_vm3, %v6208_v29  ;;  %5854 = vmatprep.mubr.msk.bf16.mxu0 %vm658_vm3, %v5348_v46  ;;  %v3965_v46 = vrot.slane %v3963_v50, 5  ;;  %v5350_v29 = vcombine.low %v3932_v4, %v3942_v25  ;;  %v5412_v8 = vcombine.low %v7778_v31, %v7783_v57  ;;  %v4414_v63 = vrot.slane %v7501_v48, 5  ;;  %v6261_v50 = vld [vmem:[%s6341_s25 + $0x28] sm:$0xf]  ;;  %v5370_v25 = vld [vmem:[%s6341_s25 + $0x30] sm:$0xe] }
 0x11e   : > { %5702 = vmatprep.mubr.msk.bf16.mxu1 %vm658_vm3, %v6209_v19  ;;  %v3951_v12 = vrot.slane %v3950_v24, 4  ;;  %v4330_v19 = vrot.slane %v6260_v11, 5  ;;  %v4334_v61 = vrot.slane %v6261_v50, 5  ;;  %v7806_v48 = vsel %vm6593_vm7, %v5396_v41, %v4411_v6  ;;  %v6213_v11 = vld [vmem:[%s6341_s25 + $0x6c] sm:$0xff]   ;;  %v8175_v41 = vld [vmem:[#allocation6_spill] sm:$0xff] }
 0x11f   : > { %v3966_v34 = vsel %vm6367_vm4, %v3961_v17, %v3965_v46  ;;  %v4413_v24 = vrot.slane %v4411_v6, 4  ;;  %v4328_v43 = vsel %vm6593_vm7, %v5384_v18, %v4327_v56  ;;  %v5385_v51 = vrot.slane %v5369_v2, 9  ;;  %v5382_v50 = vld [vmem:[%s6341_s25 + $0xc0] sm:$0xe]  ;;  %v6277_v31 = vld [vmem:[%s6341_s25 + $0xc8] sm:$0x1] }
 0x120   : > { %v3956_v4 = vsel %vm6367_vm4, %v3951_v12, %v7746_v5  ;;  %v4331_v23 = vsel %vm6593_vm7, %v4329_v9, %v4330_v19  ;;  %v6262_v5 = vld [vmem:[%s6341_s25 + $0x34] sm:$0xf]  ;;  %v6212_v12 = vld [vmem:[%s6341_s25 + $0x60] sm:$0xff]   ;;  %v5386_v18 = vrot.slane %v5370_v25, 9  ;;  %v4421_v9 = vrot.slane %v7615_v35, 5 }
 0x121   : > { %v4341_v16 = vrot.slane %v6262_v5, 5  ;;  %v7817_v62 = vsel %vm6593_vm7, %v4413_v24, %v4414_v63  ;;  %v5351_v46 = vcombine.low %v3956_v4, %v3966_v34  ;;  %v5401_v17 = vcombine.low %v4328_v43, %v4331_v23  ;;  %v5371_v24 = vld [vmem:[%s6341_s25 + $0x3c] sm:$0xe] }
 0x122   : > { %v5413_v56 = vcombine.low %v7806_v48, %v7817_v62  ;;  %v4344_v6 = vrot.slane %v8175_v41, 5  ;;  %v4335_v35 = vsel %vm6593_vm7, %v5385_v51, %v4334_v61  ;;  %v5398_v5 = vrot.slane %v5382_v50, 9 }
 0x123   : > { %v4343_v19 = vrot.slane %v4341_v16, 4  ;;  %v4342_v23 = vsel %vm6593_vm7, %v5386_v18, %v4341_v16  ;;  %v4428_v51 = vrot.slane %v7708_v52, 5  ;;  %v2408_v57 = vshll.u32 %v6277_v31, 16 }
 0x124   : > { %5855 = vmatmul.mubr.msk.bf16.gmra.mrb[24].mxu0 %vm658_vm3, %v5349_v7  ;;  %v5397_v7 = vrot.slane %v5381_v49, 9 }
 0x125   : > { %5703 = vmatmul.mubr.msk.bf16.gmra.mrb[8].mxu1 %vm658_vm3, %v6210_v47  ;;  %5858 = vmatprep.mubr.msk.bf16.mxu0 %vm658_vm3, %v5350_v29  ;;  %v4337_v47 = vrot.slane %v6263_v28, 5  ;;  %v4418_v29 = vrot.slane %v7566_v39, 5  ;;  %v8176_v39 = vld [vmem:[#allocation7_spill] sm:$0xff]  ;;  %v4345_v25 = vsel %vm6593_vm7, %v4343_v19, %v4344_v6  ;;  %v5387_v28 = vrot.slane %v5371_v24, 9 }
 0x126   : > { %5706 = vmatprep.mubr.msk.bf16.mxu1 %vm658_vm3, %v6211_v30  ;;  %v4336_v30 = vrot.slane %v4334_v61, 4  ;;  %v4348_v49 = vrot.slane %v8176_v39, 5  ;;  %v4425_v61 = vrot.slane %v7618_v58, 5  ;;  %v6264_v39 = vld [vmem:[%s6341_s25 + $0x70] sm:$0xf]  ;;  %v4432_v24 = vrot.slane %v7694_v55, 5 }
 0x127   : > { %v7829_v63 = vsel %vm6593_vm7, %v5397_v7, %v4418_v29  ;;  %v4420_v2 = vrot.slane %v4418_v29, 4  ;;  %v5100_v7 = vld [vmem:[%s6341_s25 + $0x6c] sm:$0xf]  ;;  %v8177_v29 = vld [vmem:[#allocation8_spill] sm:$0xff] }
 0x128   : > { %v4338_v34 = vsel %vm6593_vm7, %v4336_v30, %v4337_v47  ;;  %v4350_v47 = vrot.slane %v4348_v49, 4  ;;  %v6214_v30 = vld [vmem:[%s6341_s25 + $0x78] sm:$0xff]   ;;  %v7860_v16 = vsel %vm6593_vm7, %v5398_v5, %v4425_v61  ;;  %v4427_v18 = vrot.slane %v4425_v61, 4 }
 0x129   : > { %v7836_v4 = vsel %vm6593_vm7, %v4420_v2, %v4421_v9  ;;  %v5403_v9 = vcombine.low %v4342_v23, %v4345_v25  ;;  %v2221_v19 = vshrl.u32 %v5100_v7, 16  ;;  %v2224_v41 = vshll.u32 %v5100_v7, 16 }
 0x12a   : > { %v5414_v43 = vcombine.low %v7829_v63, %v7836_v4  ;;  %v7865_v58 = vsel %vm6593_vm7, %v4427_v18, %v4428_v51  ;;  %v4349_v6 = vsel %vm6593_vm7, %v5387_v28, %v4348_v49  ;;  %v4435_v49 = vrot.slane %v7739_v21, 5  ;;  %v6216_v51 = vld [vmem:[%s6341_s25 + $0x90] sm:$0xff]   ;;  %v6217_v21 = vld [vmem:[%s6341_s25 + $0x9c] sm:$0xff]  }
 0x12b   : > { %v5415_v50 = vcombine.low %v7860_v16, %v7865_v58  ;;  %v2223_v23 = vrot.slane %v2221_v19, 4  ;;  %v2226_v25 = vrot.slane %v2224_v41, 5  ;;  %v4434_v7 = vrot.slane %v4432_v24, 4 }
 0x12c   : > { %5859 = vmatmul.mubr.msk.bf16.gmra.mrb[28].mxu0 %vm658_vm3, %v5351_v46  ;;  %v5402_v46 = vcombine.low %v4335_v35, %v4338_v34  ;;  %v2230_v35 = vshll.u32 %v6264_v39, 16  ;;  %v2234_v34 = vshrl.u32 %v6264_v39, 16 }
 0x12d   : > { %5707 = vmatmul.mubr.msk.bf16.gmra.mrb[12].mxu1 %vm658_vm3, %v6212_v12  ;;  %5864 = vmatprep.mubr.msk.bf16.mxu0 %vm658_vm3, %v5401_v17  ;;  %v4351_v12 = vrot.slane %v8177_v29, 5  ;;  %v5383_v17 = vld [vmem:[%s6341_s25 + $0xcc] sm:$0xe]  ;;  %v7887_v55 = vsel %vm6593_vm7, %v4434_v7, %v4435_v49 }
 0x12e   : > { %5710 = vmatprep.mubr.msk.bf16.mxu1 %vm658_vm3, %v6213_v11  ;;  %v6215_v11 = vld [vmem:[%s6341_s25 + $0x84] sm:$0xff]   ;;  %v5399_v52 = vrot.slane %v5383_v17, 9  ;;  %v2236_v28 = vrot.slane %v2234_v34, 4  ;;  %v6265_v17 = vld [vmem:[%s6341_s25 + $0x74] sm:$0x1] }
 0x12f   : > { %v4352_v2 = vsel %vm6593_vm7, %v4350_v47, %v4351_v12  ;;  %v5106_v47 = vld [vmem:[%s6341_s25 + $0x84] sm:$0xf]  ;;  %v2227_v12 = vor.u32 %v2226_v25, %v2223_v23  ;;  %v6219_v34 = vld [vmem:[%s6341_s25 + $0xb4] sm:$0xff]  }
 0x130   : > { %v7882_v5 = vsel %vm6593_vm7, %v5399_v52, %v4432_v24  ;;  %v5404_v61 = vcombine.low %v4349_v6, %v4352_v2  ;;  %v2272_v18 = vshll.u32 %v5106_v47, 16  ;;  %v5109_v6 = vld [vmem:[%s6341_s25 + $0x90] sm:$0xf]  ;;  %v6218_v2 = vld [vmem:[%s6341_s25 + $0xa8] sm:$0xff]  }
 0x131   : > { %v5416_v29 = vcombine.low %v7882_v5, %v7887_v55  ;;  %v2228_v52 = vrot.slane %v2227_v12, 4  ;;  %v2293_v23 = vshrl.u32 %v5109_v6, 16  ;;  %v2296_v25 = vshll.u32 %v5109_v6, 16 }
 0x132   : > { %v2326_v12 = vshll.u32 %v6268_v60, 16 }
 0x133   : > { %v2298_v14 = vrot.slane %v2296_v25, 5  ;;  %v6271_v25 = vld [vmem:[%s6341_s25 + $0xa4] sm:$0x1] }
 0x134   : > { %5865 = vmatmul.mubr.msk.bf16.vlgmr.msra.gmra.mrb[0].mxu0 %vm658_vm3, %v5402_v46  ;;  %v2232_v46 = vrot.slane %v2230_v35, 5  ;;  %v5112_v35 = vld [vmem:[%s6341_s25 + $0x9c] sm:$0xf]  ;;  %v7929_v6 = vrot.slane %v2326_v12, 5 }
 0x135   : > { %5711 = vmatmul.mubr.msk.bf16.gmra.mrb[16].mxu1 %vm658_vm3, %v6214_v30  ;;  %5868 = vmatprep.mubr.msk.bf16.mxu0 %vm658_vm3, %v5403_v9  ;;  %v2240_v30 = vshll.u32 %v6265_v17, 16  ;;  %v2269_v9 = vshrl.u32 %v5106_v47, 16  ;;  %v2320_v47 = vshll.u32 %v5112_v35, 16  ;;  %v6269_v17 = vld [vmem:[%s6341_s25 + $0x8c] sm:$0x1] }
 0x136   : > { %5714 = vmatprep.mubr.msk.bf16.mxu1 %vm658_vm3, %v6215_v11  ;;  %v2237_v13 = vor.u32 %v2236_v28, %v2232_v46  ;;  %v6266_v11 = vld [vmem:[%s6341_s25 + $0x88] sm:$0xf]  ;;  %v2233_v7 = vsel %vm6367_vm4, %v2228_v52, %v2232_v46 }
 0x137   : > { %v2278_v19 = vshll.u32 %v6266_v11, 16  ;;  %v2282_v41 = vshrl.u32 %v6266_v11, 16  ;;  %v2242_v0 = vrot.slane %v2240_v30, 5  ;;  %v2271_v36 = vrot.slane %v2269_v9, 4 }
 0x138   : > { %v2238_v39 = vrot.slane %v2237_v13, 4  ;;  %v2288_v30 = vshll.u32 %v6269_v17, 16  ;;  %v2295_v9 = vrot.slane %v2293_v23, 4  ;;  %v2322_v11 = vrot.slane %v2320_v47, 5 }
 0x139   : > { %v7906_v24 = vrot.slane %v2278_v19, 5  ;;  %v2284_v49 = vrot.slane %v2282_v41, 4  ;;  %v6220_v19 = vld [vmem:[%s6341_s25 + $0xc0] sm:$0xff]  }
 0x13a   : > { %v2243_v46 = vsel %vm6367_vm4, %v2238_v39, %v2242_v0  ;;  %v5115_v39 = vld [vmem:[%s6341_s25 + $0xa8] sm:$0xf] }
 0x13b   : > { %v2285_v13 = vor.u32 %v2284_v49, %v7906_v24  ;;  %v5133_v41 = vcombine.low %v2233_v7, %v2243_v46  ;;  %v2336_v7 = vshll.u32 %v6271_v25, 16  ;;  %v2344_v45 = vshll.u32 %v5115_v39, 16 }
 0x13c   : > { %5869 = vmatmul.mubr.msk.bf16.gmra.mrb[4].mxu0 %vm658_vm3, %v5404_v61  ;;  %v6267_v61 = vld [vmem:[%s6341_s25 + $0x94] sm:$0xf] }
 0x13d   : > { %5715 = vmatmul.mubr.msk.bf16.gmra.mrb[20].mxu1 %vm658_vm3, %v6216_v51  ;;  %5872 = vmatprep.mubr.msk.bf16.mxu0 %vm658_vm3, %v5405_v10  ;;  %v2274_v10 = vrot.slane %v2272_v18, 5  ;;  %v2302_v51 = vshll.u32 %v6267_v61, 16  ;;  %v2306_v28 = vshrl.u32 %v6267_v61, 16  ;;  %v2286_v0 = vrot.slane %v2285_v13, 4 }
 0x13e   : > { %5718 = vmatprep.mubr.msk.bf16.mxu1 %vm658_vm3, %v6217_v21  ;;  %v2317_v21 = vshrl.u32 %v5112_v35, 16  ;;  %v6270_v35 = vld [vmem:[%s6341_s25 + $0x98] sm:$0x1]  ;;  %v2341_v61 = vshrl.u32 %v5115_v39, 16  ;;  %v5121_v39 = vld [vmem:[%s6341_s25 + $0xc0] sm:$0xf] }
 0x13f   : > { %v2275_v15 = vor.u32 %v2274_v10, %v2271_v36  ;;  %v7926_v26 = vrot.slane %v2302_v51, 5  ;;  %v2290_v36 = vrot.slane %v2288_v30, 5  ;;  %v2299_v10 = vor.u32 %v2298_v14, %v2295_v9  ;;  %v5118_v51 = vld [vmem:[%s6341_s25 + $0xb4] sm:$0xf] }
 0x140   : > { %v2319_v18 = vrot.slane %v2317_v21, 4  ;;  %v2354_v21 = vshrl.u32 %v6272_v27, 16  ;;  %v2365_v20 = vshrl.u32 %v5118_v51, 16  ;;  %v2368_v42 = vshll.u32 %v5118_v51, 16 }
 0x141   : > { %v2276_v52 = vrot.slane %v2275_v15, 4  ;;  %v2291_v46 = vsel %vm6367_vm4, %v2286_v0, %v2290_v36  ;;  %v2300_v15 = vrot.slane %v2299_v10, 4  ;;  %v2338_v30 = vrot.slane %v2336_v7, 5 }
 0x142   : > { %v2323_v23 = vor.u32 %v2322_v11, %v2319_v18  ;;  %v2343_v9 = vrot.slane %v2341_v61, 4  ;;  %v2356_v11 = vrot.slane %v2354_v21, 4  ;;  %v6276_v61 = vld [vmem:[%s6341_s25 + $0xbc] sm:$0x1] }
 0x143   : > { %v2281_v47 = vsel %vm6367_vm4, %v2276_v52, %v7906_v24  ;;  %v2305_v0 = vsel %vm6367_vm4, %v2300_v15, %v7926_v26  ;;  %v2384_v22 = vshll.u32 %v6276_v61, 16 }
 0x144   : > { %5873 = vmatmul.mubr.msk.bf16.gmra.mrb[8].mxu0 %vm658_vm3, %v5406_v40  ;;  %v2330_v40 = vshrl.u32 %v6268_v60, 16  ;;  %v2324_v17 = vrot.slane %v2323_v23, 4  ;;  %v5135_v24 = vcombine.low %v2281_v47, %v2291_v46 }
 0x145   : > { %5719 = vmatmul.mubr.msk.bf16.gmra.mrb[24].mxu1 %vm658_vm3, %v6218_v2  ;;  %5876 = vmatprep.mubr.msk.bf16.mxu0 %vm658_vm3, %v5407_v54  ;;  %v2308_v54 = vrot.slane %v2306_v28, 4 }
 0x146   : > { %5722 = vmatprep.mubr.msk.bf16.mxu1 %vm658_vm3, %v6219_v34  ;;  %v2332_v2 = vrot.slane %v2330_v40, 4  ;;  %v2312_v34 = vshll.u32 %v6270_v35, 16  ;;  %v2329_v10 = vsel %vm6367_vm4, %v2324_v17, %v7929_v6  ;;  %v2410_v17 = vrot.slane %v2408_v57, 5 }
 0x147   : > { %v2309_v49 = vor.u32 %v2308_v54, %v7926_v26  ;;  %v2346_v54 = vrot.slane %v2344_v45, 5  ;;  %v6274_v26 = vld [vmem:[%s6341_s25 + $0xb0] sm:$0x1] }
 0x148   : > { %v2333_v28 = vor.u32 %v2332_v2, %v7929_v6  ;;  %v2314_v60 = vrot.slane %v2312_v34, 5  ;;  %v2360_v35 = vshll.u32 %v6274_v26, 16  ;;  %v2389_v34 = vshrl.u32 %v5121_v39, 16 }
 0x149   : > { %v2310_v13 = vrot.slane %v2309_v49, 4  ;;  %v2347_v38 = vor.u32 %v2346_v54, %v2343_v9  ;;  %v2392_v6 = vshll.u32 %v5121_v39, 16  ;;  %v6275_v49 = vld [vmem:[%s6341_s25 + $0xc4] sm:$0xf] }
 0x14a   : > { %v2334_v14 = vrot.slane %v2333_v28, 4  ;;  %v2398_v23 = vshll.u32 %v6275_v49, 16  ;;  %v2402_v25 = vshrl.u32 %v6275_v49, 16  ;;  %v2362_v45 = vrot.slane %v2360_v35, 5 }
 0x14b   : > { %v2315_v36 = vsel %vm6367_vm4, %v2310_v13, %v2314_v60  ;;  %v2348_v51 = vrot.slane %v2347_v38, 4  ;;  %v2386_v60 = vrot.slane %v2384_v22, 5 }
 0x14c   : > { %5877 = vmatmul.mubr.msk.bf16.gmra.mrb[12].mxu0 %vm658_vm3, %v5408_v53  ;;  %v2350_v53 = vshll.u32 %v6272_v27, 16  ;;  %v2339_v59 = vsel %vm6367_vm4, %v2334_v14, %v2338_v30  ;;  %v5136_v44 = vcombine.low %v2305_v0, %v2315_v36  ;;  %v2391_v27 = vrot.slane %v2389_v34, 4 }
 0x14d   : > { %5723 = vmatmul.mubr.msk.bf16.gmra.mrb[28].mxu1 %vm658_vm3, %v6220_v19  ;;  %5880 = vmatprep.mubr.msk.bf16.mxu0 %vm658_vm3, %v5409_v33  ;;  %v6273_v33 = vld [vmem:[%s6341_s25 + $0xb8] sm:$0xf]  ;;  %v2367_v19 = vrot.slane %v2365_v20, 4  ;;  %v2400_v21 = vrot.slane %v2398_v23, 5  ;;  %v2404_v47 = vrot.slane %v2402_v25, 4 }
 0x14e   : > { %5744 = vmatprep.mubr.msk.bf16.mxu1 %vm658_vm3, %v5133_v41  ;;  %v2374_v12 = vshll.u32 %v6273_v33, 16  ;;  %v2378_v40 = vshrl.u32 %v6273_v33, 16  ;;  %v2352_v18 = vrot.slane %v2350_v53, 5  ;;  %v2370_v41 = vrot.slane %v2368_v42, 5 }
 0x14f   : > { %v2394_v53 = vrot.slane %v2392_v6, 5 }
 0x150   : > { %v2376_v52 = vrot.slane %v2374_v12, 5  ;;  %v2380_v2 = vrot.slane %v2378_v40, 4  ;;  %v2353_v20 = vsel %vm6367_vm4, %v2348_v51, %v2352_v18  ;;  %v2405_v12 = vor.u32 %v2404_v47, %v2400_v21 }
 0x151   : > { %v2395_v33 = vor.u32 %v2394_v53, %v2391_v27 }
 0x152   : > { %v2381_v7 = vor.u32 %v2380_v2, %v2376_v52  ;;  %v2406_v13 = vrot.slane %v2405_v12, 4  ;;  %v8028_v2 = vld [vmem:[%s8109_s2] ss:$0 sm:$0xff] }
 0x153   : > { %v2396_v40 = vrot.slane %v2395_v33, 4 }
 0x154   : > { %5881 = vmatmul.mubr.msk.bf16.gmra.mrb[16].mxu0 %vm658_vm3, %v5410_v37  ;;  %v2357_v37 = vor.u32 %v2356_v11, %v2352_v18  ;;  %v2382_v15 = vrot.slane %v2381_v7, 4  ;;  %v2411_v9 = vsel %vm6367_vm4, %v2406_v13, %v2410_v17 }
 0x155   : > { %5745 = vmatmul.mubr.msk.bf16.vlgmr.msra.gmra.mrb[16].mxu1 %vm658_vm3, %v7735_v1  ;;  %5884 = vmatprep.mubr.msk.bf16.mxu0 %vm658_vm3, %v5411_v3  ;;  %v2371_v1 = vor.u32 %v2370_v41, %v2367_v19  ;;  %v5137_v3 = vcombine.low %v2329_v10, %v2339_v59  ;;  %v2401_v30 = vsel %vm6367_vm4, %v2396_v40, %v2400_v21 }
 0x156   : > { %5748 = vmatprep.mubr.msk.bf16.mxu1 %vm658_vm3, %v5135_v24  ;;  %v2358_v28 = vrot.slane %v2357_v37, 4  ;;  %v2387_v48 = vsel %vm6367_vm4, %v2382_v15, %v2386_v60  ;;  %v5140_v14 = vcombine.low %v2401_v30, %v2411_v9 }
 0x157   : > { %v2372_v46 = vrot.slane %v2371_v1, 4 }
 0x158   : > { %v2363_v42 = vsel %vm6367_vm4, %v2358_v28, %v2362_v45 }
 0x159   : > { %v5138_v62 = vcombine.low %v2353_v20, %v2363_v42 }
 0x15c   : > { %5885 = vmatmul.mubr.msk.bf16.gmra.mrb[20].mxu0 %vm658_vm3, %v5412_v8  ;;  %v2377_v8 = vsel %vm6367_vm4, %v2372_v46, %v2376_v52 }
 0x15d   : > { %5749 = vmatmul.mubr.msk.bf16.gmra.mrb[20].mxu1 %vm658_vm3, %v5136_v44  ;;  %5888 = vmatprep.mubr.msk.bf16.mxu0 %vm658_vm3, %v5413_v56  ;;  %v5139_v56 = vcombine.low %v2377_v8, %v2387_v48 }
 0x15e   : > { %5752 = vmatprep.mubr.msk.bf16.mxu1 %vm658_vm3, %v5137_v3 }
 0x164   : > { %5889 = vmatmul.mubr.msk.bf16.gmra.mrb[24].mxu0 %vm658_vm3, %v5414_v43 }
 0x165   : > { %5753 = vmatmul.mubr.msk.bf16.gmra.mrb[24].mxu1 %vm658_vm3, %v5138_v62  ;;  %5892 = vmatprep.mubr.msk.bf16.mxu0 %vm658_vm3, %v5415_v50 }
 0x166   : > { %5756 = vmatprep.mubr.msk.bf16.mxu1 %vm658_vm3, %v5139_v56 }
 0x16c   : > { %5893 = vmatmul.mubr.msk.bf16.gmra.mrb[28].mxu0 %vm658_vm3, %v5416_v29 }
 0x16d   : > { %5757 = vmatmul.mubr.msk.bf16.gmra.mrb[28].mxu1 %vm658_vm3, %v5140_v14 }
 0x1e8   : > { %v5696_v63 = vpop.f32.mrb[0].mxu1 }
 0x1e9   : > { %v1821_v4 = vpop.f32.mrb[1].mxu1 }
 0x1ea   : > { %v5697_v43 = vpop.f32.mrb[2].mxu1 }
 0x1eb   : > { %v1824_v16 = vpop.f32.mrb[3].mxu1 }
 0x1f0   : > { %v5700_v58 = vpop.f32.mrb[4].mxu1 }
 0x1f1   : > { %v1837_v50 = vpop.f32.mrb[5].mxu1 }
 0x1f2   : > { %v5701_v54 = vpop.f32.mrb[6].mxu1 }
 0x1f3   : > { %v1840_v18 = vpop.f32.mrb[7].mxu1 }
 0x1f8   : > { %v5704_v11 = vpop.f32.mrb[8].mxu1 }
 0x1f9   : > { %v1853_v32 = vpop.f32.mrb[9].mxu1 }
 0x1fa   : > { %v5705_v24 = vpop.f32.mrb[10].mxu1 }
 0x1fb   : > { %v1856_v19 = vpop.f32.mrb[11].mxu1 }
 0x200   : > { %v8017_v41 = vpop.f32.mrb[12].mxu1 }
 0x201   : > { %v8019_v5 = vpop.f32.mrb[13].mxu1 }
 0x202   : > { %v8021_v55 = vpop.f32.mrb[14].mxu1 }
 0x203   : > { %v8023_v29 = vpop.f32.mrb[15].mxu1 }
 0x207   : > { %v5866_v52 = vpop.f32.mrb[0].mxu0 }
 0x208   : > { %v5898_v39 = vadd.f32 %v5866_v52, %v5696_v63  ;;  %v4572_v0 = vpop.f32.mrb[1].mxu0 }
 0x209   : > { %v5899_v36 = vadd.f32 %v4572_v0, %v1821_v4  ;;  %v5867_v10 = vpop.f32.mrb[2].mxu0 }
 0x20a   : > { %v4740_v59 = vadd.f32 %v5898_v39, %v8028_v2  ;;  %v5900_v38 = vadd.f32 %v5867_v10, %v5697_v43  ;;  %v4575_v37 = vpop.f32.mrb[3].mxu0 }
 0x20b   : > { %v4738_v26 = vadd.f32 %v5899_v36, %v8028_v2  ;;  %v5901_v35 = vadd.f32 %v4575_v37, %v1824_v16 }
 0x20c   : > { %v4772_v34 = vmax.f32 %v4740_v59, 0.0  ;;  %v4741_v6 = vadd.f32 %v5900_v38, %v8028_v2 }
 0x20d   : > { %v4770_v49 = vmax.f32 %v4738_v26, 0.0  ;;  %v4739_v23 = vadd.f32 %v5901_v35, %v8028_v2 }
 0x20e   : > { %4804 = vst [vmem:[%s8035_s20 + $0x10] sm:$0xff] %v4772_v34  ;;  %v4773_v25 = vmax.f32 %v4741_v6, 0.0 }
 0x20f   : > { %4802 = vst [vmem:[%s8035_s20] sm:$0xff] %v4770_v49  ;;  %v4771_v1 = vmax.f32 %v4739_v23, 0.0  ;;  %v5870_v7 = vpop.f32.mrb[4].mxu0 }
 0x210   : > { %4805 = vst [vmem:[%s8035_s20 + $0x18] sm:$0xff] %v4773_v25  ;;  %v5902_v61 = vadd.f32 %v5870_v7, %v5700_v58  ;;  %v4588_v22 = vpop.f32.mrb[5].mxu0 }
 0x211   : > { %4803 = vst [vmem:[%s8035_s20 + $0x8] sm:$0xff] %v4771_v1  ;;  %v5903_v44 = vadd.f32 %v4588_v22, %v1837_v50  ;;  %v5871_v3 = vpop.f32.mrb[6].mxu0 }
 0x212   : > { %v4744_v51 = vadd.f32 %v5902_v61, %v8028_v2  ;;  %v5904_v28 = vadd.f32 %v5871_v3, %v5701_v54  ;;  %v4591_v45 = vpop.f32.mrb[7].mxu0 }
 0x213   : > { %v4742_v27 = vadd.f32 %v5903_v44, %v8028_v2  ;;  %v5905_v53 = vadd.f32 %v4591_v45, %v1840_v18 }
 0x214   : > { %v4776_v21 = vmax.f32 %v4744_v51, 0.0  ;;  %v4745_v47 = vadd.f32 %v5904_v28, %v8028_v2 }
 0x215   : > { %v4774_v46 = vmax.f32 %v4742_v27, 0.0  ;;  %v4743_v15 = vadd.f32 %v5905_v53, %v8028_v2 }
 0x216   : > { %4808 = vst [vmem:[%s8035_s20 + $0x30] sm:$0xff] %v4776_v21  ;;  %v4777_v60 = vmax.f32 %v4745_v47, 0.0 }
 0x217   : > { %4806 = vst [vmem:[%s8035_s20 + $0x20] sm:$0xff] %v4774_v46  ;;  %v4775_v20 = vmax.f32 %v4743_v15, 0.0  ;;  %v5874_v42 = vpop.f32.mrb[8].mxu0 }
 0x218   : > { %4809 = vst [vmem:[%s8035_s20 + $0x38] sm:$0xff] %v4777_v60  ;;  %v5906_v33 = vadd.f32 %v5874_v42, %v5704_v11  ;;  %v4604_v12 = vpop.f32.mrb[9].mxu0 }
 0x219   : > { %4807 = vst [vmem:[%s8035_s20 + $0x28] sm:$0xff] %v4775_v20  ;;  %v5907_v31 = vadd.f32 %v4604_v12, %v1853_v32  ;;  %v5875_v57 = vpop.f32.mrb[10].mxu0 }
 0x21a   : > { %v4748_v8 = vadd.f32 %v5906_v33, %v8028_v2  ;;  %v5908_v48 = vadd.f32 %v5875_v57, %v5705_v24  ;;  %v4607_v62 = vpop.f32.mrb[11].mxu0 }
 0x21b   : > { %v4746_v56 = vadd.f32 %v5907_v31, %v8028_v2  ;;  %v5909_v40 = vadd.f32 %v4607_v62, %v1856_v19 }
 0x21c   : > { %v4780_v13 = vmax.f32 %v4748_v8, 0.0  ;;  %v4749_v17 = vadd.f32 %v5908_v48, %v8028_v2 }
 0x21d   : > { %v4778_v30 = vmax.f32 %v4746_v56, 0.0  ;;  %v4747_v9 = vadd.f32 %v5909_v40, %v8028_v2 }
 0x21e   : > { %4812 = vst [vmem:[%s8035_s20 + $0x50] sm:$0xff] %v4780_v13  ;;  %v4781_v14 = vmax.f32 %v4749_v17, 0.0 }
 0x21f   : > { %4810 = vst [vmem:[%s8035_s20 + $0x40] sm:$0xff] %v4778_v30  ;;  %v4779_v63 = vmax.f32 %v4747_v9, 0.0  ;;  %v5878_v4 = vpop.f32.mrb[12].mxu0 }
 0x220   : > { %4813 = vst [vmem:[%s8035_s20 + $0x58] sm:$0xff] %v4781_v14  ;;  %v5910_v43 = vadd.f32 %v5878_v4, %v8017_v41  ;;  %v4620_v16 = vpop.f32.mrb[13].mxu0 }
 0x221   : > { %4811 = vst [vmem:[%s8035_s20 + $0x48] sm:$0xff] %v4779_v63  ;;  %v5911_v58 = vadd.f32 %v4620_v16, %v8019_v5  ;;  %v5879_v50 = vpop.f32.mrb[14].mxu0 }
 0x222   : > { %v4752_v54 = vadd.f32 %v5910_v43, %v8028_v2  ;;  %v5912_v18 = vadd.f32 %v5879_v50, %v8021_v55  ;;  %v4623_v11 = vpop.f32.mrb[15].mxu0 }
 0x223   : > { %v4750_v32 = vadd.f32 %v5911_v58, %v8028_v2  ;;  %v5913_v24 = vadd.f32 %v4623_v11, %v8023_v29 }
 0x224   : > { %v4784_v19 = vmax.f32 %v4752_v54, 0.0  ;;  %v4753_v41 = vadd.f32 %v5912_v18, %v8028_v2 }
 0x225   : > { %v4782_v52 = vmax.f32 %v4750_v32, 0.0  ;;  %v4751_v39 = vadd.f32 %v5913_v24, %v8028_v2 }
 0x226   : > { %4816 = vst [vmem:[%s8035_s20 + $0x70] sm:$0xff] %v4784_v19  ;;  %v4785_v5 = vmax.f32 %v4753_v41, 0.0 }
 0x227   : > { %4814 = vst [vmem:[%s8035_s20 + $0x60] sm:$0xff] %v4782_v52  ;;  %v4783_v0 = vmax.f32 %v4751_v39, 0.0  ;;  %v5882_v36 = vpop.f32.mrb[16].mxu0 }
 0x228   : > { %4817 = vst [vmem:[%s8035_s20 + $0x78] sm:$0xff] %v4785_v5  ;;  %v5746_v10 = vpop.f32.mrb[16].mxu1  ;;  %v4636_v55 = vpop.f32.mrb[17].mxu0 }
 0x229   : > { %4815 = vst [vmem:[%s8035_s20 + $0x68] sm:$0xff] %v4783_v0  ;;  %v5914_v59 = vadd.f32 %v5882_v36, %v5746_v10  ;;  %v2611_v38 = vpop.f32.mrb[17].mxu1  ;;  %v5883_v37 = vpop.f32.mrb[18].mxu0 }
 0x22a   : > { %v5915_v29 = vadd.f32 %v4636_v55, %v2611_v38  ;;  %v5747_v26 = vpop.f32.mrb[18].mxu1  ;;  %v4639_v35 = vpop.f32.mrb[19].mxu0 }
 0x22b   : > { %v4756_v34 = vadd.f32 %v5914_v59, %v8028_v2  ;;  %v5916_v6 = vadd.f32 %v5883_v37, %v5747_v26  ;;  %v2614_v49 = vpop.f32.mrb[19].mxu1 }
 0x22c   : > { %v4754_v23 = vadd.f32 %v5915_v29, %v8028_v2  ;;  %v5917_v25 = vadd.f32 %v4639_v35, %v2614_v49 }
 0x22d   : > { %v4788_v1 = vmax.f32 %v4756_v34, 0.0  ;;  %v4757_v7 = vadd.f32 %v5916_v6, %v8028_v2 }
 0x22e   : > { %v4786_v61 = vmax.f32 %v4754_v23, 0.0  ;;  %v4755_v22 = vadd.f32 %v5917_v25, %v8028_v2 }
 0x22f   : > { %4820 = vst [vmem:[%s8035_s20 + $0x90] sm:$0xff] %v4788_v1  ;;  %v4789_v44 = vmax.f32 %v4757_v7, 0.0  ;;  %v5886_v3 = vpop.f32.mrb[20].mxu0 }
 0x230   : > { %4818 = vst [vmem:[%s8035_s20 + $0x80] sm:$0xff] %v4786_v61  ;;  %v4787_v51 = vmax.f32 %v4755_v22, 0.0  ;;  %v5750_v28 = vpop.f32.mrb[20].mxu1  ;;  %v4652_v45 = vpop.f32.mrb[21].mxu0 }
 0x231   : > { %4821 = vst [vmem:[%s8035_s20 + $0x98] sm:$0xff] %v4789_v44  ;;  %v5918_v27 = vadd.f32 %v5886_v3, %v5750_v28  ;;  %v2627_v53 = vpop.f32.mrb[21].mxu1  ;;  %v5887_v21 = vpop.f32.mrb[22].mxu0 }
 0x232   : > { %4819 = vst [vmem:[%s8035_s20 + $0x88] sm:$0xff] %v4787_v51  ;;  %v5919_v47 = vadd.f32 %v4652_v45, %v2627_v53  ;;  %v5751_v46 = vpop.f32.mrb[22].mxu1  ;;  %v4655_v15 = vpop.f32.mrb[23].mxu0 }
 0x233   : > { %v4760_v60 = vadd.f32 %v5918_v27, %v8028_v2  ;;  %v5920_v20 = vadd.f32 %v5887_v21, %v5751_v46  ;;  %v2630_v42 = vpop.f32.mrb[23].mxu1 }
 0x234   : > { %v4758_v33 = vadd.f32 %v5919_v47, %v8028_v2  ;;  %v5921_v12 = vadd.f32 %v4655_v15, %v2630_v42 }
 0x235   : > { %v4792_v31 = vmax.f32 %v4760_v60, 0.0  ;;  %v4761_v57 = vadd.f32 %v5920_v20, %v8028_v2 }
 0x236   : > { %v4790_v8 = vmax.f32 %v4758_v33, 0.0  ;;  %v4759_v48 = vadd.f32 %v5921_v12, %v8028_v2 }
 0x237   : > { %4824 = vst [vmem:[%s8035_s20 + $0xb0] sm:$0xff] %v4792_v31  ;;  %v4793_v62 = vmax.f32 %v4761_v57, 0.0  ;;  %v5890_v56 = vpop.f32.mrb[24].mxu0 }
 0x238   : > { %4822 = vst [vmem:[%s8035_s20 + $0xa0] sm:$0xff] %v4790_v8  ;;  %v4791_v40 = vmax.f32 %v4759_v48, 0.0  ;;  %v5754_v13 = vpop.f32.mrb[24].mxu1  ;;  %v4668_v17 = vpop.f32.mrb[25].mxu0 }
 0x239   : > { %4825 = vst [vmem:[%s8035_s20 + $0xb8] sm:$0xff] %v4793_v62  ;;  %v5922_v30 = vadd.f32 %v5890_v56, %v5754_v13  ;;  %v2643_v9 = vpop.f32.mrb[25].mxu1  ;;  %v5891_v14 = vpop.f32.mrb[26].mxu0 }
 0x23a   : > { %4823 = vst [vmem:[%s8035_s20 + $0xa8] sm:$0xff] %v4791_v40  ;;  %v5923_v63 = vadd.f32 %v4668_v17, %v2643_v9  ;;  %v5755_v4 = vpop.f32.mrb[26].mxu1  ;;  %v4671_v43 = vpop.f32.mrb[27].mxu0 }
 0x23b   : > { %v4764_v16 = vadd.f32 %v5922_v30, %v8028_v2  ;;  %v5924_v58 = vadd.f32 %v5891_v14, %v5755_v4  ;;  %v2646_v50 = vpop.f32.mrb[27].mxu1 }
 0x23c   : > { %v4762_v54 = vadd.f32 %v5923_v63, %v8028_v2  ;;  %v5925_v18 = vadd.f32 %v4671_v43, %v2646_v50 }
 0x23d   : > { %v4796_v11 = vmax.f32 %v4764_v16, 0.0  ;;  %v4765_v32 = vadd.f32 %v5924_v58, %v8028_v2 }
 0x23e   : > { %v4794_v24 = vmax.f32 %v4762_v54, 0.0  ;;  %v4763_v19 = vadd.f32 %v5925_v18, %v8028_v2 }
 0x23f   : > { %4828 = vst [vmem:[%s8035_s20 + $0xd0] sm:$0xff] %v4796_v11  ;;  %v4797_v41 = vmax.f32 %v4765_v32, 0.0  ;;  %v5894_v52 = vpop.f32.mrb[28].mxu0 }
 0x240   : > { %4826 = vst [vmem:[%s8035_s20 + $0xc0] sm:$0xff] %v4794_v24  ;;  %v4795_v39 = vmax.f32 %v4763_v19, 0.0  ;;  %v5758_v5 = vpop.f32.mrb[28].mxu1  ;;  %v4684_v0 = vpop.f32.mrb[29].mxu0 }
 0x241   : > { %4829 = vst [vmem:[%s8035_s20 + $0xd8] sm:$0xff] %v4797_v41  ;;  %v5926_v36 = vadd.f32 %v5894_v52, %v5758_v5  ;;  %v2659_v10 = vpop.f32.mrb[29].mxu1  ;;  %v5895_v55 = vpop.f32.mrb[30].mxu0 }
 0x242   : > { %4827 = vst [vmem:[%s8035_s20 + $0xc8] sm:$0xff] %v4795_v39  ;;  %v5927_v59 = vadd.f32 %v4684_v0, %v2659_v10  ;;  %v5759_v38 = vpop.f32.mrb[30].mxu1  ;;  %v4687_v37 = vpop.f32.mrb[31].mxu0 }
 0x243   : > { %v4768_v29 = vadd.f32 %v5926_v36, %v8028_v2  ;;  %v5928_v26 = vadd.f32 %v5895_v55, %v5759_v38  ;;  %v2662_v35 = vpop.f32.mrb[31].mxu1 }
 0x244   : > { %v4766_v34 = vadd.f32 %v5927_v59, %v8028_v2  ;;  %v5929_v6 = vadd.f32 %v4687_v37, %v2662_v35 }
 0x245   : > { %v4800_v49 = vmax.f32 %v4768_v29, 0.0  ;;  %v4769_v23 = vadd.f32 %v5928_v26, %v8028_v2 }
 0x246   : > { %v4798_v25 = vmax.f32 %v4766_v34, 0.0  ;;  %v4767_v1 = vadd.f32 %v5929_v6, %v8028_v2 }
 0x247   : > { %4832 = vst [vmem:[%s8035_s20 + $0xf0] sm:$0xff] %v4800_v49  ;;  %v4801_v7 = vmax.f32 %v4769_v23, 0.0 }
 0x248   : > { %4830 = vst [vmem:[%s8035_s20 + $0xe0] sm:$0xff] %v4798_v25  ;;  %v4799_v61 = vmax.f32 %v4767_v1, 0.0 }
 0x249   : > { %4833 = vst [vmem:[%s8035_s20 + $0xf8] sm:$0xff] %v4801_v7 }
 0x24a   : > { %4831 = vst [vmem:[%s8035_s20 + $0xe8] sm:$0xff] %v4799_v61 }
 0x24b PF: > { %s13_s12 = sadd.s32 1, %s6284_s12  }
 0x24c   : > { %p10_p4 = scmp.ge.s32.totalorder %s13_s12, 4  }
 0x24e   :  { %12 = sbr.rel (!%p10_p4) target bundleno = 1 (0x1), region = 72 }

</bundles_post_ra>
